<compile_context>
chip_gen: v5e
topology: v5e:2x2
jax: 0.10.0
libtpu: 0.0.40
codegen_flags: <defaults>
</compile_context>

<pallas_src>
import functools

import jax
import jax.numpy as jnp
from jax.experimental import pallas as pl
from jax.experimental.pallas import tpu as pltpu

EMBEDDING_DIM = 768
HIDDEN1 = 512
HIDDEN2 = 256
NUM_CLASSES = 10

_LANE = 128
_BF16_SUBLANE = 16  # bf16 packs 16 rows per vreg


def _round_up(x, m):
    return (x + m - 1) // m * m


def _mlp_kernel(x_ref, w1_ref, b1_ref, w2_ref, b2_ref, w3_ref, b3_ref, o_ref):
    # x arrives f32 (no wrapper-side cast pass over HBM); cast to bf16 on the
    # VPU right before the first matmul.
    x = x_ref[...].astype(jnp.bfloat16)
    # fc1 + ReLU   (bf16 MXU operands, f32 accumulate, f32 elementwise)
    h1 = jnp.dot(x, w1_ref[...], preferred_element_type=jnp.float32)
    h1 = jnp.maximum(h1 + b1_ref[...], 0.0)
    # fc2 + ReLU
    h2 = jnp.dot(h1.astype(jnp.bfloat16), w2_ref[...],
                 preferred_element_type=jnp.float32)
    h2 = jnp.maximum(h2 + b2_ref[...], 0.0)
    # fc3 + sigmoid  (lane-dense padded head: C -> 128)
    logits = jnp.dot(h2.astype(jnp.bfloat16), w3_ref[...],
                     preferred_element_type=jnp.float32)
    o_ref[...] = jax.nn.sigmoid(logits + b3_ref[...]).astype(o_ref.dtype)


def prepare_params(w1, b1, w2, b2, w3, b3):
    """One-time weight preparation (call ONCE, not per forward).

    Weights stored [in, out] (== PyTorch weight.T) in bf16; biases f32 [1, H];
    classifier head zero-padded to a lane-dense width (num_classes -> 128).
    """
    C = w3.shape[1]
    C_pad = _round_up(C, _LANE)
    w1_b = jnp.asarray(w1, jnp.bfloat16)
    w2_b = jnp.asarray(w2, jnp.bfloat16)
    w3_b = jnp.pad(jnp.asarray(w3, jnp.float32),
                   ((0, 0), (0, C_pad - C))).astype(jnp.bfloat16)
    b1_f = jnp.asarray(b1, jnp.float32).reshape(1, -1)
    b2_f = jnp.asarray(b2, jnp.float32).reshape(1, -1)
    b3_f = jnp.pad(jnp.asarray(b3, jnp.float32).reshape(1, -1),
                   ((0, 0), (0, C_pad - C)))
    return w1_b, b1_f, w2_b, b2_f, w3_b, b3_f


@functools.partial(jax.jit, static_argnames=("num_classes", "block_b"))
def keyword_classifier_forward(x, w1_b, b1_f, w2_b, b2_f, w3_b, b3_f, *,
                               num_classes=NUM_CLASSES, block_b=256):
    """x: [B, embedding_dim] f32, prepared params -> probs: [B, num_classes] f32."""
    B, D = x.shape
    H1 = w1_b.shape[1]
    H2 = w2_b.shape[1]
    C_pad = w3_b.shape[1]

    # Batch tile: multiple of 16 (bf16 packing for the output block).  Cap the
    # tile at ceil(B_pad/2) whenever there is more than one tile of rows so the
    # "parallel" grid has >= 2 steps (keeps both v7x TensorCores busy; on
    # v5e/v6e it just adds one cheap serial step).
    B_pad16 = _round_up(B, _BF16_SUBLANE)
    bb = min(_round_up(block_b, _BF16_SUBLANE), B_pad16)
    if B_pad16 > _BF16_SUBLANE:
        bb = min(bb, _round_up(pl.cdiv(B_pad16, 2), _BF16_SUBLANE))
    B_pad = _round_up(B, bb)

    # Zero-pad the batch only when needed (skipped entirely when B % bb == 0).
    x_p = x if B_pad == B else jnp.pad(x, ((0, B_pad - B), (0, 0)))

    grid = (B_pad // bb,)
    inv = lambda i: (0, 0)  # grid-invariant blocks (DMA'd once, reused)

    out = pl.pallas_call(
        _mlp_kernel,
        out_shape=jax.ShapeDtypeStruct((B_pad, C_pad), jnp.bfloat16),
        grid=grid,
        in_specs=[
            pl.BlockSpec((bb, D), lambda i: (i, 0)),   # x tile (pipelined, f32)
            pl.BlockSpec((D, H1), inv),                # W1 (bf16, grid-invariant)
            pl.BlockSpec((1, H1), inv),                # b1 (f32)
            pl.BlockSpec((H1, H2), inv),               # W2
            pl.BlockSpec((1, H2), inv),                # b2
            pl.BlockSpec((H2, C_pad), inv),            # W3 (lane-padded)
            pl.BlockSpec((1, C_pad), inv),             # b3 (lane-padded)
        ],
        out_specs=pl.BlockSpec((bb, C_pad), lambda i: (i, 0)),
        compiler_params=pltpu.CompilerParams(
            dimension_semantics=("parallel",),
            vmem_limit_bytes=32 * 1024 * 1024,
        ),
    )(x_p, w1_b, b1_f, w2_b, b2_f, w3_b, b3_f)

    # Slice away batch padding + padded classifier lanes; upcast probs to f32.
    return out[:B, :num_classes].astype(jnp.float32)


def init_params(key, embedding_dim=EMBEDDING_DIM, num_classes=NUM_CLASSES):
    """Deterministic synthetic params (PyTorch-Linear-style uniform init)."""
    ks = jax.random.split(key, 6)

    def linear(kw, kb, fan_in, fan_out):
        bound = 1.0 / jnp.sqrt(fan_in)
        # Stored as [in, out] (transposed relative to PyTorch's [out, in]).
        w = jax.random.uniform(kw, (fan_in, fan_out), jnp.float32, -bound, bound)
        b = jax.random.uniform(kb, (fan_out,), jnp.float32, -bound, bound)
        return w, b

    w1, b1 = linear(ks[0], ks[1], embedding_dim, HIDDEN1)
    w2, b2 = linear(ks[2], ks[3], HIDDEN1, HIDDEN2)
    w3, b3 = linear(ks[4], ks[5], HIDDEN2, num_classes)
    return w1, b1, w2, b2, w3, b3


def _reference_forward_f32(x, w1, b1, w2, b2, w3, b3):
    h1 = jnp.maximum(x @ w1 + b1, 0.0)
    h2 = jnp.maximum(h1 @ w2 + b2, 0.0)
    return jax.nn.sigmoid(h2 @ w3 + b3)


def _reference_forward_bf16(x, w1, b1, w2, b2, w3, b3):
    """Mimics kernel numerics: bf16 MXU operands, f32 accumulate/elementwise."""
    bf = lambda a: a.astype(jnp.bfloat16).astype(jnp.float32)
    h1 = jnp.maximum(bf(x) @ bf(w1) + b1, 0.0)
    h2 = jnp.maximum(bf(h1) @ bf(w2) + b2, 0.0)
    return jax.nn.sigmoid(bf(h2) @ bf(w3) + b3)


if __name__ == "__main__":
    key = jax.random.PRNGKey(0)
    k_x, k_p = jax.random.split(key)
    raw_params = init_params(k_p)
    prepared = prepare_params(*raw_params)   # one-time weight prep

    # Small main case; with the v7x cap this still yields a 2-step parallel grid.
    B = 64
    x = jax.random.normal(k_x, (B, EMBEDDING_DIM), jnp.float32)
    out = jax.block_until_ready(keyword_classifier_forward(x, *prepared))
    assert out.shape == (B, NUM_CLASSES)

    ref_bf = _reference_forward_bf16(x, *raw_params)
    ref_f32 = _reference_forward_f32(x, *raw_params)
    assert jnp.allclose(out, ref_bf, atol=1e-2, rtol=2e-2), "mismatch vs bf16 reference"
    assert jnp.allclose(out, ref_f32, atol=5e-2, rtol=5e-2), "mismatch vs f32 reference"

    # Ragged small batch: exercises batch padding + single-tile path.
    x_small = x[:5]
    out_small = jax.block_until_ready(keyword_classifier_forward(x_small, *prepared))
    assert out_small.shape == (5, NUM_CLASSES)
    assert jnp.allclose(out_small, ref_bf[:5], atol=1e-2, rtol=2e-2), "ragged mismatch"

    print("KERNEL_OK")
</pallas_src>

<mosaic_0001>
module attributes {stable_mosaic.version = 11 : i64} {
  func.func @_mlp_kernel(%arg0: i32, %arg1: memref<32x768xf32, #tpu.memory_space<vmem>>, %arg2: memref<768x512xbf16, #tpu.memory_space<vmem>>, %arg3: memref<1x512xf32, #tpu.memory_space<vmem>>, %arg4: memref<512x256xbf16, #tpu.memory_space<vmem>>, %arg5: memref<1x256xf32, #tpu.memory_space<vmem>>, %arg6: memref<256x128xbf16, #tpu.memory_space<vmem>>, %arg7: memref<1x128xf32, #tpu.memory_space<vmem>>, %arg8: memref<32x128xbf16, #tpu.memory_space<vmem>>) attributes {dimension_semantics = [#tpu.dimension_semantics<parallel>], iteration_bounds = array<i64: 2>, scalar_prefetch = 0 : i64, scratch_operands = 0 : i64, tpu.core_type = #tpu.core_type<tc>, window_params = [{transform_indices = @transform_0, window_bounds = array<i64: 32, 768>}, {pipeline_mode = #tpu.pipeline_mode<synchronous>, transform_indices = @transform_1, window_bounds = array<i64: 768, 512>}, {pipeline_mode = #tpu.pipeline_mode<synchronous>, transform_indices = @transform_2, window_bounds = array<i64: 1, 512>}, {pipeline_mode = #tpu.pipeline_mode<synchronous>, transform_indices = @transform_3, window_bounds = array<i64: 512, 256>}, {pipeline_mode = #tpu.pipeline_mode<synchronous>, transform_indices = @transform_4, window_bounds = array<i64: 1, 256>}, {pipeline_mode = #tpu.pipeline_mode<synchronous>, transform_indices = @transform_5, window_bounds = array<i64: 256, 128>}, {pipeline_mode = #tpu.pipeline_mode<synchronous>, transform_indices = @transform_6, window_bounds = array<i64: 1, 128>}, {transform_indices = @transform_7, window_bounds = array<i64: 32, 128>}]} {
    %c0 = arith.constant 0 : index
    %c0_0 = arith.constant 0 : index
    %0 = vector.load %arg1[%c0, %c0_0] : memref<32x768xf32, #tpu.memory_space<vmem>>, vector<32x768xf32>
    %1 = arith.truncf %0 : vector<32x768xf32> to vector<32x768xbf16>
    %c0_1 = arith.constant 0 : index
    %c0_2 = arith.constant 0 : index
    %2 = vector.load %arg2[%c0_1, %c0_2] : memref<768x512xbf16, #tpu.memory_space<vmem>>, vector<768x512xbf16>
    %cst = arith.constant dense<0.000000e+00> : vector<32x512xf32>
    %3 = tpu.matmul %1, %2, %cst {dimension_numbers = #tpu.dot_dimension_numbers<[1], [0], [0], [1], [0, 0, 1, 1], [], []>} : vector<32x768xbf16>, vector<768x512xbf16>, vector<32x512xf32> -> vector<32x512xf32>
    %c0_3 = arith.constant 0 : index
    %c0_4 = arith.constant 0 : index
    %4 = vector.load %arg3[%c0_3, %c0_4] : memref<1x512xf32, #tpu.memory_space<vmem>>, vector<1x512xf32>
    %5 = vector.broadcast %4 : vector<1x512xf32> to vector<32x512xf32>
    %6 = arith.addf %3, %5 : vector<32x512xf32>
    %cst_5 = arith.constant 0.000000e+00 : f32
    %7 = vector.broadcast %cst_5 : f32 to vector<32x512xf32>
    %8 = arith.maximumf %6, %7 : vector<32x512xf32>
    %9 = arith.truncf %8 : vector<32x512xf32> to vector<32x512xbf16>
    %c0_6 = arith.constant 0 : index
    %c0_7 = arith.constant 0 : index
    %10 = vector.load %arg4[%c0_6, %c0_7] : memref<512x256xbf16, #tpu.memory_space<vmem>>, vector<512x256xbf16>
    %cst_8 = arith.constant dense<0.000000e+00> : vector<32x256xf32>
    %11 = tpu.matmul %9, %10, %cst_8 {dimension_numbers = #tpu.dot_dimension_numbers<[1], [0], [0], [1], [0, 0, 1, 1], [], []>} : vector<32x512xbf16>, vector<512x256xbf16>, vector<32x256xf32> -> vector<32x256xf32>
    %c0_9 = arith.constant 0 : index
    %c0_10 = arith.constant 0 : index
    %12 = vector.load %arg5[%c0_9, %c0_10] : memref<1x256xf32, #tpu.memory_space<vmem>>, vector<1x256xf32>
    %13 = vector.broadcast %12 : vector<1x256xf32> to vector<32x256xf32>
    %14 = arith.addf %11, %13 : vector<32x256xf32>
    %cst_11 = arith.constant 0.000000e+00 : f32
    %15 = vector.broadcast %cst_11 : f32 to vector<32x256xf32>
    %16 = arith.maximumf %14, %15 : vector<32x256xf32>
    %17 = arith.truncf %16 : vector<32x256xf32> to vector<32x256xbf16>
    %c0_12 = arith.constant 0 : index
    %c0_13 = arith.constant 0 : index
    %18 = vector.load %arg6[%c0_12, %c0_13] : memref<256x128xbf16, #tpu.memory_space<vmem>>, vector<256x128xbf16>
    %cst_14 = arith.constant dense<0.000000e+00> : vector<32x128xf32>
    %19 = tpu.matmul %17, %18, %cst_14 {dimension_numbers = #tpu.dot_dimension_numbers<[1], [0], [0], [1], [0, 0, 1, 1], [], []>} : vector<32x256xbf16>, vector<256x128xbf16>, vector<32x128xf32> -> vector<32x128xf32>
    %c0_15 = arith.constant 0 : index
    %c0_16 = arith.constant 0 : index
    %20 = vector.load %arg7[%c0_15, %c0_16] : memref<1x128xf32, #tpu.memory_space<vmem>>, vector<1x128xf32>
    %21 = vector.broadcast %20 : vector<1x128xf32> to vector<32x128xf32>
    %22 = arith.addf %19, %21 : vector<32x128xf32>
    %23 = arith.negf %22 : vector<32x128xf32>
    %24 = math.exp %23 : vector<32x128xf32>
    %cst_17 = arith.constant 1.000000e+00 : f32
    %25 = vector.broadcast %cst_17 : f32 to vector<32x128xf32>
    %26 = arith.addf %25, %24 : vector<32x128xf32>
    %27 = arith.divf %25, %26 : vector<32x128xf32>
    %28 = arith.truncf %27 : vector<32x128xf32> to vector<32x128xbf16>
    %c0_18 = arith.constant 0 : index
    %c0_19 = arith.constant 0 : index
    %29 = vector.load %arg8[%c0_18, %c0_19] : memref<32x128xbf16, #tpu.memory_space<vmem>>, vector<32x128xbf16>
    tpu.vector_store %arg8[%c0_18, %c0_19], %28 {strides = array<i32>} : memref<32x128xbf16, #tpu.memory_space<vmem>>, vector<32x128xbf16>,
    return
  }
  func.func @transform_0(%arg0: i32) -> (i32, i32) {
    %c0_i32 = arith.constant 0 : i32
    %c0_i32_0 = arith.constant 0 : i32
    return %arg0, %c0_i32 : i32, i32
  }
  func.func @transform_1(%arg0: i32) -> (i32, i32) {
    %c0_i32 = arith.constant 0 : i32
    %c0_i32_0 = arith.constant 0 : i32
    %c0_i32_1 = arith.constant 0 : i32
    return %c0_i32, %c0_i32_0 : i32, i32
  }
  func.func @transform_2(%arg0: i32) -> (i32, i32) {
    %c0_i32 = arith.constant 0 : i32
    %c0_i32_0 = arith.constant 0 : i32
    %c0_i32_1 = arith.constant 0 : i32
    return %c0_i32, %c0_i32_0 : i32, i32
  }
  func.func @transform_3(%arg0: i32) -> (i32, i32) {
    %c0_i32 = arith.constant 0 : i32
    %c0_i32_0 = arith.constant 0 : i32
    %c0_i32_1 = arith.constant 0 : i32
    return %c0_i32, %c0_i32_0 : i32, i32
  }
  func.func @transform_4(%arg0: i32) -> (i32, i32) {
    %c0_i32 = arith.constant 0 : i32
    %c0_i32_0 = arith.constant 0 : i32
    %c0_i32_1 = arith.constant 0 : i32
    return %c0_i32, %c0_i32_0 : i32, i32
  }
  func.func @transform_5(%arg0: i32) -> (i32, i32) {
    %c0_i32 = arith.constant 0 : i32
    %c0_i32_0 = arith.constant 0 : i32
    %c0_i32_1 = arith.constant 0 : i32
    return %c0_i32, %c0_i32_0 : i32, i32
  }
  func.func @transform_6(%arg0: i32) -> (i32, i32) {
    %c0_i32 = arith.constant 0 : i32
    %c0_i32_0 = arith.constant 0 : i32
    %c0_i32_1 = arith.constant 0 : i32
    return %c0_i32, %c0_i32_0 : i32, i32
  }
  func.func @transform_7(%arg0: i32) -> (i32, i32) {
    %c0_i32 = arith.constant 0 : i32
    %c0_i32_0 = arith.constant 0 : i32
    return %arg0, %c0_i32 : i32, i32
  }
}

</mosaic_0001>

<bundles_post_ra>
// kernel: keyword_classifier_forward.1
= control target key start
LH: loop header
LB: loop body
LE: loop exit
PB: predicated region body
PF: predicated region fallthrough
CT: control target
= control target key end

     0   :  { %12 = vsyncpa [#allocation3], 0  ;;  %s5137_s0 = inlined_call_operand.hbm [shape: f32[64,768], index: 0, kind: input, shape index: {}]   ;;  %s5138_s1 = inlined_call_operand.hbm [shape: bf16[768,512], index: 1, kind: input, shape index: {}]   ;;  %s5139_s2 = inlined_call_operand.hbm [shape: f32[1,512], index: 2, kind: input, shape index: {}]   ;;  %s5140_s3 = inlined_call_operand.hbm [shape: bf16[512,256], index: 3, kind: input, shape index: {}]   ;;  %s5141_s4 = inlined_call_operand.vmem [shape: f32[1,256], index: 4, kind: input, shape index: {}]   ;;  %s5142_s5 = inlined_call_operand.hbm [shape: bf16[256,128], index: 5, kind: input, shape index: {}]   ;;  %s5143_s6 = inlined_call_operand.vmem [shape: f32[1,128], index: 6, kind: input, shape index: {}]   ;;  %s5144_s7 = inlined_call_operand.vmem [shape: bf16[64,128], index: 7, kind: output, shape index: {}]  }
   0x1   :  { %14 = vsyncpa [#allocation3 + $0x1], 0 }
   0x2   :  { %15 = vsyncpa [#allocation5], 0 }
   0x3   :  { %16 = vsyncpa [#allocation8], 0  ;;  %s4724_s24 = smov 0   ;;  %s4726_s25 = smov 0  }
   0x4   :  { %s4728_s26 = smov 0   ;;  %s4730_s27 = smov 0  }
   0x5 LB: > { %s5145_s28 = sadd.s32 4294967295, %s4670_s27   ;;  %p42_p0 = scmp.ne.s32.totalorder %s4662_s25, %s4658_s24  ;;  %s4670_s27 = sphi %s4730_s27, %s5156_s27   ;;  %s4666_s26 = sphi %s4728_s26, %s5155_s26   ;;  %s4662_s25 = sphi %s4726_s25, %s5154_s25   ;;  %s4658_s24 = sphi %s4724_s24, %s5153_s24  }
   0x6   : > { %p4746_p1 = scmp.eq.s32.totalorder %s5145_s28, 0  ;;  %p2961_p2 = scmp.ge.s32.totalorder %s4670_s27, 1 }
   0x7   : > { %p205_p3 = scmp.lt.s32.totalorder %s4670_s27, 3  ;;  %s216_s10 = sshll.u32 %s5138_s1, 4  ;;  %s217_s10 = int_to_ptr.hbm [resolvable:$true] %s216_s10 }
   0x8   : > { %p4754_p4 = por %p4746_p1, %p42_p0  ;;  %s4672_s12 = smov [#allocation4]  }
   0x9   : > { %p4761_p5 = pnand %p2961_p2, %p205_p3  ;;  %s218_s13 = sshll.u32 %s4672_s12, 4  ;;  %s219_s13 = int_to_ptr.vmem [resolvable:$true] %s218_s13 }
   0xa   : > { %s242_s17 = sshll.u32 %s5140_s3, 4  ;;  %s4673_s18 = smov 256   ;;  %s243_s17 = int_to_ptr.hbm [resolvable:$true] %s242_s17 }
   0xb   : > { %p4391_p6 = pneg %p4761_p5  ;;  %s4674_s19 = smov 16  }
   0xc   : > { %s4675_s20 = smov [#allocation7]   ;;  %s4676_s22 = smov 128  }
   0xd   : > { %p4769_p7 = pnand %p4391_p6, %p4746_p1  ;;  %s244_s21 = sshll.u32 %s4675_s20, 4  ;;  %s245_s21 = int_to_ptr.vmem [resolvable:$true] %s244_s21 }
   0xe   : > { %s4677_s23 = smov 8   ;;  %s231_s9 = sshll.u32 %s5139_s2, 4  ;;  %s232_s9 = int_to_ptr.hbm [resolvable:$true] %s231_s9 }
   0xf   : > { %4394 = dma.hbm_to_vmem [thread:$0]  (!%p4769_p7), %s217_s10, 24576, %s219_s13, [#allocation5], %s4673_s18, %s4673_s18, %s4674_s19  }
  0x10   : > { %4400 = dma.hbm_to_vmem [thread:$0]  (!%p4769_p7), %s243_s17, 8192, %s245_s21, [#allocation8], %s4676_s22, %s4676_s22, %s4677_s23  }
  0x11   : > { %s4678_s12 = smov [#allocation6]   ;;  %s259_s16 = sshll.u32 %s5142_s5, 4  ;;  %s260_s16 = int_to_ptr.hbm [resolvable:$true] %s259_s16 }
  0x12   : > { %s233_s10 = sshll.u32 %s4678_s12, 4  ;;  %s4679_s17 = smov [#allocation9]   ;;  %s234_s10 = int_to_ptr.vmem [resolvable:$true] %s233_s10 }
  0x13   : > { %4397 = dma.hbm_to_vmem [thread:$0]  (!%p4769_p7), %s232_s9, 64, %s234_s10, [#allocation5]  }
  0x14   : > { %s261_s18 = sshll.u32 %s4679_s17, 4  ;;  %s4680_s19 = smov 64   ;;  %s262_s18 = int_to_ptr.vmem [resolvable:$true] %s261_s18 }
  0x15   : > { %s4681_s20 = smov 4   ;;  %s4791_s21 = sadd.s32 1, %s4670_s27  }
  0x16   : > { %4403 = dma.hbm_to_vmem [thread:$0]  (!%p4769_p7), %s260_s16, 2048, %s262_s18, [#allocation8], %s4680_s19, %s4680_s19, %s4681_s20  }
  0x17   : > { %s26_s22 = ssub.s32 %s4670_s27, %s4791_s21  ;;  %s29_s23 = sadd.s32 1, %s4666_s26 }
  0x18   : > { %p27_p8 = scmp.eq.s32.totalorder %s26_s22, 0  ;;  %p36_p9 = scmp.ne.s32.totalorder %s4666_s26, %s4662_s25 }
  0x19   : > { %p37_p10 = scmp.eq.s32.totalorder %s4670_s27, 0  ;;  %p4412_p12 = scmp.lt.s32.totalorder %s4670_s27, 2 }
  0x1a   : > { %s4800_s24 = scalar_select %p27_p8, %s4666_s26, %s29_s23  }
  0x1b   : > { %p38_p11 = por %p37_p10, %p36_p9  ;;  %s278_s8 = sand.u32 1, %s4666_s26  }
  0x1c   : > { %s4371_s9 = smul.u32 192, %s4670_s27  ;;  %s279_s19 = scalar_lea.sflag [#allocation3], %s278_s8 }
  0x1d   : > { %s4370_s12 = smul.u32 192, %s278_s8  ;;  %p4808_p13 = pnand %p4412_p12, %p38_p11 }
  0x1e   : > { %s288_s14 = scalar_lea.hbm %s5137_s0, %s4371_s9  ;;  %s4605_s10 = scalar_lea.hbm %s5137_s0, 384 }
  0x1f   : > { %s289_s16 = sshll.u32 %s288_s14, 4  ;;  %s282_s17 = scalar_lea.vmem [#allocation2], %s4370_s12  ;;  %s290_s16 = int_to_ptr.hbm [resolvable:$true] %s289_s16 }
  0x20   : > { %s291_s18 = sshll.u32 %s282_s17, 4  ;;  %s4598_s20 = sshra.s32 %s290_s16, 4  ;;  %s292_s18 = int_to_ptr.vmem [resolvable:$true] %s291_s18  ;;  %s4599_s20 = int_to_ptr.hbm [resolvable:$true] %s4598_s20 }
  0x21   : > { %s4600_s22 = scalar_lea.hbm %s4599_s20, 192  ;;  %p4602_p2 = pneg %p4808_p13 }
  0x22   : > { %p4601_p0 = scmp.ne.s32.totalorder %s4599_s20, %s4600_s22  ;;  %p4606_p7 = scmp.lt.s32.totalorder %s4599_s20, %s5137_s0 }
  0x23   : > { %p4607_p8 = scmp.lt.s32.totalorder %s4605_s10, %s4600_s22 }
  0x24   : > { %p4603_p3 = pnand %p4602_p2, %p4601_p0 }
  0x25   : > { %p4608_p9 = por %p4607_p8, %p4606_p7 }
  0x26   : > { %p4604_p6 = pneg %p4603_p3 }
  0x28   : > { %p4609_p10 = pnand %p4608_p9, %p4604_p6 }
  0x2a   : > { %4612 = shalt.err (!%p4609_p10)
}
  0x2b   : > { %s4682_s8 = smov 768   ;;  %s4683_s12 = smov 48  }
  0x2c   : > { %4407 = dma.hbm_to_vmem [thread:$0]  (!%p4808_p13), %s290_s16, 3072, %s292_s18, %s279_s19, %s4682_s8, %s4682_s8, %s4683_s12  }
  0x2d   : > { %303 = sbr.rel (%p4761_p5) target bundleno = 768 (0x300), region = 48  ;;  %s305_s14 = sand.u32 (!%p4761_p5), 1, %s4662_s25  }
  0x2e   : > { %s4372_s17 = smul.u32 (!%p4761_p5), 192, %s305_s14  ;;  %s306_s23 = scalar_lea.sflag (!%p4761_p5), [#allocation3], %s305_s14 }
  0x30   : > { %s4825_s9 = scalar_lea.vmem (!%p4761_p5), [#allocation2], %s4372_s17 }
  0x32   : > { %4645 = dma.done.wait (%p4754_p4), %s306_s23, 3072  }
  0x33   : > { %4647 = vsyncadd (%p4754_p4), %s306_s23, 4294964224 }
  0x34   : > { %4649 = dma.done.wait (%p4746_p1), [#allocation5], 24640  }
  0x35   : > { %4651 = vsyncadd (%p4746_p1), [#allocation5], 4294942656 }
  0x36   : > { %4653 = dma.done.wait (%p4746_p1), [#allocation8], 10240  }
  0x37   : > { %4655 = vsyncadd (%p4746_p1), [#allocation8], 4294957056  ;;  %v3091_v0 = vld [vmem:[#allocation4 + $0xe0] sm:$0xf]  ;;  %v4101_v1 = vld [vmem:[#allocation4 + $0xec] sm:$0xf0] }
  0x38   : > { %v3219_v2 = vld [vmem:[#allocation4 + $0x1e0] sm:$0xf]  ;;  %v3092_v3 = vor.u32 %v4101_v1, %v3091_v0  ;;  %v4133_v4 = vld [vmem:[#allocation4 + $0x1ec] sm:$0xf0]  ;;  %s5151_s15 = sadd.s32 4294967295, %s4670_s27  }
  0x39   : > { %v3347_v5 = vld [vmem:[#allocation4 + $0x2e0] sm:$0xf]  ;;  %v4165_v6 = vld [vmem:[#allocation4 + $0x2ec] sm:$0xf0]  ;;  %v3220_v7 = vor.u32 %v4133_v4, %v3219_v2  ;;  %s2975_s16 = sshll.u32 %s5151_s15, 2 }
  0x3a   : > { %v3348_v8 = vor.u32 %v4165_v6, %v3347_v5  ;;  %v3475_v9 = vld [vmem:[#allocation4 + $0x3e0] sm:$0xf]  ;;  %v4197_v10 = vld [vmem:[#allocation4 + $0x3ec] sm:$0xf0]  ;;  %1566 = vmatpush.bf16.msra.mxu0 %v3092_v3  ;;  %p363_p1 = scmp.lt.s32.totalorder %s2975_s16, 7 }
  0x3b   : > { %v3075_v11 = vld [vmem:[#allocation4 + $0xc0] sm:$0xf]  ;;  %v3476_v12 = vor.u32 %v4197_v10, %v3475_v9  ;;  %v4097_v13 = vld [vmem:[#allocation4 + $0xcc] sm:$0xf0]  ;;  %1585 = vmatpush.bf16.msra.mxu1 %v3220_v7 }
  0x3c   : > { %v3203_v14 = vld [vmem:[#allocation4 + $0x1c0] sm:$0xf]  ;;  %v4129_v15 = vld [vmem:[#allocation4 + $0x1cc] sm:$0xf0]  ;;  %1604 = vmatpush.bf16.msra.mxu2 %v3348_v8  ;;  %v3076_v16 = vor.u32 %v4097_v13, %v3075_v11  ;;  %s5158_s16 = smov (!%p363_p1, %s2975_s16), 7 }
  0x3d   : > { %v3204_v17 = vor.u32 %v4129_v15, %v3203_v14  ;;  %v3331_v18 = vld [vmem:[#allocation4 + $0x2c0] sm:$0xf]  ;;  %v4161_v19 = vld [vmem:[#allocation4 + $0x2cc] sm:$0xf0]  ;;  %1623 = vmatpush.bf16.msra.mxu3 %v3476_v12  ;;  %s2976_s27 = sshll.u32 %s5158_s16, 2 }
  0x3e   : > { %v3459_v20 = vld [vmem:[#allocation4 + $0x3c0] sm:$0xf]  ;;  %v3332_v21 = vor.u32 %v4161_v19, %v3331_v18  ;;  %v4193_v22 = vld [vmem:[#allocation4 + $0x3cc] sm:$0xf0]  ;;  %1567 = vmatpush.bf16.msra.mxu0 %v3076_v16  ;;  %s5120_s20 = scalar_lea.vmem %s5144_s7, %s2976_s27 }
  0x3f   : > { %v3059_v23 = vld [vmem:[#allocation4 + $0xa0] sm:$0xf]  ;;  %v4093_v24 = vld [vmem:[#allocation4 + $0xac] sm:$0xf0]  ;;  %v3460_v25 = vor.u32 %v4193_v22, %v3459_v20  ;;  %1586 = vmatpush.bf16.msra.mxu1 %v3204_v17 }
  0x40   : > { %v3187_v26 = vld [vmem:[#allocation4 + $0x1a0] sm:$0xf]  ;;  %v4125_v27 = vld [vmem:[#allocation4 + $0x1ac] sm:$0xf0]  ;;  %v3060_v29 = vor.u32 %v4093_v24, %v3059_v23  ;;  %1605 = vmatpush.bf16.msra.mxu2 %v3332_v21 }
  0x41   : > { %v3315_v28 = vld [vmem:[#allocation4 + $0x2a0] sm:$0xf]  ;;  %v4157_v30 = vld [vmem:[#allocation4 + $0x2ac] sm:$0xf0]  ;;  %v3188_v33 = vor.u32 %v4125_v27, %v3187_v26  ;;  %1624 = vmatpush.bf16.msra.mxu3 %v3460_v25 }
  0x42   : > { %v3443_v31 = vld [vmem:[#allocation4 + $0x3a0] sm:$0xf]  ;;  %v4189_v32 = vld [vmem:[#allocation4 + $0x3ac] sm:$0xf0]  ;;  %v3316_v34 = vor.u32 %v4157_v30, %v3315_v28  ;;  %1568 = vmatpush.bf16.msra.mxu0 %v3060_v29  ;;  %v369_v30 = vld [vmem:[%s4825_s9 + $0x8] sm:$0xff] }
  0x43   : > { %v3043_v35 = vld [vmem:[#allocation4 + $0x80] sm:$0xf]  ;;  %v4089_v36 = vld [vmem:[#allocation4 + $0x8c] sm:$0xf0]  ;;  %v3444_v38 = vor.u32 %v4189_v32, %v3443_v31  ;;  %1587 = vmatpush.bf16.msra.mxu1 %v3188_v33  ;;  %v375_v31 = vld [vmem:[%s4825_s9 + $0x38] sm:$0xff] }
  0x44   : > { %v3171_v37 = vld [vmem:[#allocation4 + $0x180] sm:$0xf]  ;;  %v4121_v39 = vld [vmem:[#allocation4 + $0x18c] sm:$0xf0]  ;;  %v3044_v44 = vor.u32 %v4089_v36, %v3043_v35  ;;  %1606 = vmatpush.bf16.msra.mxu2 %v3316_v34  ;;  %v4099_v32 = vld [vmem:[#allocation4 + $0xe4] sm:$0xf] }
  0x45   : > { %v3299_v40 = vld [vmem:[#allocation4 + $0x280] sm:$0xf]  ;;  %v4153_v41 = vld [vmem:[#allocation4 + $0x28c] sm:$0xf0]  ;;  %v3172_v45 = vor.u32 %v4121_v39, %v3171_v37  ;;  %1625 = vmatpush.bf16.msra.mxu3 %v3444_v38  ;;  %v3093_v33 = vld [vmem:[#allocation4 + $0xf0] sm:$0xf0] }
  0x46   : > { %v3427_v42 = vld [vmem:[#allocation4 + $0x380] sm:$0xf]  ;;  %v4185_v43 = vld [vmem:[#allocation4 + $0x38c] sm:$0xf0]  ;;  %v3300_v46 = vor.u32 %v4153_v41, %v3299_v40  ;;  %1569 = vmatpush.bf16.msra.mxu0 %v3044_v44  ;;  %v371_v41 = vld [vmem:[%s4825_s9 + $0x18] sm:$0xff]  ;;  %v3096_v44 = vor.u32 %v4099_v32, %v3093_v33 }
  0x47   : > { %v3027_v47 = vld [vmem:[#allocation4 + $0x60] sm:$0xf]  ;;  %v4085_v48 = vld [vmem:[#allocation4 + $0x6c] sm:$0xf0]  ;;  %v3428_v50 = vor.u32 %v4185_v43, %v3427_v42  ;;  %1588 = vmatpush.bf16.msra.mxu1 %v3172_v45  ;;  %v377_v42 = vld [vmem:[%s4825_s9 + $0x48] sm:$0xff] }
  0x48   : > { %v3155_v49 = vld [vmem:[#allocation4 + $0x160] sm:$0xf]  ;;  %v4117_v51 = vld [vmem:[#allocation4 + $0x16c] sm:$0xf0]  ;;  %v3028_v56 = vor.u32 %v4085_v48, %v3027_v47  ;;  %1607 = vmatpush.bf16.msra.mxu2 %v3300_v46  ;;  %v4131_v47 = vld [vmem:[#allocation4 + $0x1e4] sm:$0xf] }
  0x49   : > { %v3283_v52 = vld [vmem:[#allocation4 + $0x260] sm:$0xf]  ;;  %v4149_v53 = vld [vmem:[#allocation4 + $0x26c] sm:$0xf0]  ;;  %v3156_v57 = vor.u32 %v4117_v51, %v3155_v49  ;;  %1626 = vmatpush.bf16.msra.mxu3 %v3428_v50  ;;  %v3221_v50 = vld [vmem:[#allocation4 + $0x1f0] sm:$0xf0] }
  0x4a   : > { %v3411_v54 = vld [vmem:[#allocation4 + $0x360] sm:$0xf]  ;;  %v4181_v55 = vld [vmem:[#allocation4 + $0x36c] sm:$0xf0]  ;;  %v3284_v58 = vor.u32 %v4149_v53, %v3283_v52  ;;  %1570 = vmatpush.bf16.msra.mxu0 %v3028_v56  ;;  %v4095_v51 = vld [vmem:[#allocation4 + $0xc4] sm:$0xf]  ;;  %v4849_v53 = vpack.c.bf16 %v375_v31, %v369_v30 }
  0x4b   : > { %v3011_v59 = vld [vmem:[#allocation4 + $0x40] sm:$0xf]  ;;  %v4081_v60 = vld [vmem:[#allocation4 + $0x4c] sm:$0xf0]  ;;  %v3412_v62 = vor.u32 %v4181_v55, %v3411_v54  ;;  %1589 = vmatpush.bf16.msra.mxu1 %v3156_v57  ;;  %v3077_v52 = vld [vmem:[#allocation4 + $0xd0] sm:$0xf0]  ;;  %v4853_v57 = vpack.c.bf16 %v377_v42, %v371_v41 }
  0x4c   : > { %v3139_v61 = vld [vmem:[#allocation4 + $0x140] sm:$0xf]  ;;  %v4113_v63 = vld [vmem:[#allocation4 + $0x14c] sm:$0xf0]  ;;  %v3012_v4 = vor.u32 %v4081_v60, %v3011_v59  ;;  %1608 = vmatpush.bf16.msra.mxu2 %v3284_v58  ;;  %v3224_v59 = vor.u32 %v4131_v47, %v3221_v50  ;;  %v3080_v60 = vor.u32 %v4095_v51, %v3077_v52  ;;  %v4083_v30 = vld [vmem:[#allocation4 + $0x64] sm:$0xf] }
  0x4d   : > { %v3267_v0 = vld [vmem:[#allocation4 + $0x240] sm:$0xf]  ;;  %v4145_v1 = vld [vmem:[#allocation4 + $0x24c] sm:$0xf0]  ;;  %v3140_v5 = vor.u32 %v4113_v63, %v3139_v61  ;;  %1627 = vmatpush.bf16.msra.mxu3 %v3412_v62  ;;  %v4127_v63 = vld [vmem:[#allocation4 + $0x1c4] sm:$0xf] }
  0x4e   : > { %v3395_v2 = vld [vmem:[#allocation4 + $0x340] sm:$0xf]  ;;  %v4177_v3 = vld [vmem:[#allocation4 + $0x34c] sm:$0xf0]  ;;  %v3268_v6 = vor.u32 %v4145_v1, %v3267_v0  ;;  %1571 = vmatpush.bf16.msra.mxu0 %v3012_v4  ;;  %v3205_v1 = vld [vmem:[#allocation4 + $0x1d0] sm:$0xf0] }
  0x4f   : > { %v2995_v7 = vld [vmem:[#allocation4 + $0x20] sm:$0xf]  ;;  %v4077_v8 = vld [vmem:[#allocation4 + $0x2c] sm:$0xf0]  ;;  %v3396_v10 = vor.u32 %v4177_v3, %v3395_v2  ;;  %1590 = vmatpush.bf16.msra.mxu1 %v3140_v5  ;;  %v4091_v2 = vld [vmem:[#allocation4 + $0xa4] sm:$0xf] }
  0x50   : > { %v3123_v9 = vld [vmem:[#allocation4 + $0x120] sm:$0xf]  ;;  %v4109_v11 = vld [vmem:[#allocation4 + $0x12c] sm:$0xf0]  ;;  %v2996_v17 = vor.u32 %v4077_v8, %v2995_v7  ;;  %1609 = vmatpush.bf16.msra.mxu2 %v3268_v6  ;;  %v3061_v3 = vld [vmem:[#allocation4 + $0xb0] sm:$0xf0]  ;;  %v3208_v7 = vor.u32 %v4127_v63, %v3205_v1 }
  0x51   : > { %v3251_v12 = vld [vmem:[#allocation4 + $0x220] sm:$0xf]  ;;  %v4141_v13 = vld [vmem:[#allocation4 + $0x22c] sm:$0xf0]  ;;  %v3124_v21 = vor.u32 %v4109_v11, %v3123_v9  ;;  %1628 = vmatpush.bf16.msra.mxu3 %v3396_v10  ;;  %v3064_v8 = vor.u32 %v4091_v2, %v3061_v3  ;;  %v4123_v11 = vld [vmem:[#allocation4 + $0x1a4] sm:$0xf] }
  0x52   : > { %v3379_v14 = vld [vmem:[#allocation4 + $0x320] sm:$0xf]  ;;  %v4173_v15 = vld [vmem:[#allocation4 + $0x32c] sm:$0xf0]  ;;  %v3252_v22 = vor.u32 %v4141_v13, %v3251_v12  ;;  %1572 = vmatpush.bf16.msra.mxu0 %v2996_v17  ;;  %v3189_v13 = vld [vmem:[#allocation4 + $0x1b0] sm:$0xf0] }
  0x53   : > { %v2979_v16 = vld [vmem:[#allocation4] sm:$0xf]  ;;  %v4073_v18 = vld [vmem:[#allocation4 + $0xc] sm:$0xf0]  ;;  %v3380_v26 = vor.u32 %v4173_v15, %v3379_v14  ;;  %1591 = vmatpush.bf16.msra.mxu1 %v3124_v21  ;;  %v4087_v14 = vld [vmem:[#allocation4 + $0x84] sm:$0xf] }
  0x54   : > { %v3107_v19 = vld [vmem:[#allocation4 + $0x100] sm:$0xf]  ;;  %v4105_v20 = vld [vmem:[#allocation4 + $0x10c] sm:$0xf0]  ;;  %v2980_v34 = vor.u32 %v4073_v18, %v2979_v16  ;;  %1610 = vmatpush.bf16.msra.mxu2 %v3252_v22  ;;  %v3045_v15 = vld [vmem:[#allocation4 + $0x90] sm:$0xf0]  ;;  %v3192_v22 = vor.u32 %v4123_v11, %v3189_v13 }
  0x55   : > { %v3235_v23 = vld [vmem:[#allocation4 + $0x200] sm:$0xf]  ;;  %v4137_v24 = vld [vmem:[#allocation4 + $0x20c] sm:$0xf0]  ;;  %v3108_v38 = vor.u32 %v4105_v20, %v3107_v19  ;;  %1629 = vmatpush.bf16.msra.mxu3 %v3380_v26  ;;  %v4119_v21 = vld [vmem:[#allocation4 + $0x184] sm:$0xf] }
  0x56   : > { %v3363_v25 = vld [vmem:[#allocation4 + $0x300] sm:$0xf]  ;;  %v4169_v27 = vld [vmem:[#allocation4 + $0x30c] sm:$0xf0]  ;;  %v3236_v39 = vor.u32 %v4137_v24, %v3235_v23  ;;  %1573 = vmatpush.bf16.msra.mxu0 %v2980_v34  ;;  %v3048_v23 = vor.u32 %v4087_v14, %v3045_v15  ;;  %v3173_v24 = vld [vmem:[#allocation4 + $0x190] sm:$0xf0] }
  0x57   : > { %v368_v28 = vld [vmem:[%s4825_s9] sm:$0xff]  ;;  %v374_v29 = vld [vmem:[%s4825_s9 + $0x30] sm:$0xff]  ;;  %v3364_v43 = vor.u32 %v4169_v27, %v3363_v25  ;;  %1592 = vmatpush.bf16.msra.mxu1 %v3108_v38  ;;  %v389_v38 = vld [vmem:[%s4825_s9 + $0xa8] sm:$0xff] }
  0x58   : > { %v370_v35 = vld [vmem:[%s4825_s9 + $0x10] sm:$0xff]  ;;  %v3731_v36 = vld [vmem:[#allocation4 + $0x5e0] sm:$0xf]  ;;  %v4847_v48 = vpack.c.bf16 %v374_v29, %v368_v28  ;;  %1611 = vmatpush.bf16.msra.mxu2 %v3236_v39  ;;  %v381_v28 = vld [vmem:[%s4825_s9 + $0x68] sm:$0xff]  ;;  %v3176_v39 = vor.u32 %v4119_v21, %v3173_v24 }
  0x59   : > { %v4261_v37 = vld [vmem:[#allocation4 + $0x5ec] sm:$0xf0]  ;;  %v376_v40 = vld [vmem:[%s4825_s9 + $0x40] sm:$0xff]  ;;  %1630 = vmatpush.bf16.msra.mxu3 %v3364_v43  ;;  %v387_v29 = vld [vmem:[%s4825_s9 + $0x98] sm:$0xff] }
  0x5a   : > { %v3603_v45 = vld [vmem:[#allocation4 + $0x4e0] sm:$0xf]  ;;  %v4229_v46 = vld [vmem:[#allocation4 + $0x4ec] sm:$0xf0]  ;;  %v3732_v49 = vor.u32 %v4261_v37, %v3731_v36  ;;  %v4851_v54 = vpack.c.bf16 %v376_v40, %v370_v35  ;;  %1574 = vmatmul.bf16.vlgmr.msra.gmra.mxu0 %v4847_v48  ;;  %1593 = vmatmul.bf16.vlgmr.msra.gmra.mxu1 %v4849_v53  ;;  %v3029_v31 = vld [vmem:[#allocation4 + $0x70] sm:$0xf0]  ;;  %v4869_v50 = vpack.c.bf16 %v387_v29, %v381_v28 }
  0x5b   : > { %v3715_v55 = vld [vmem:[#allocation4 + $0x5c0] sm:$0xf]  ;;  %v4257_v56 = vld [vmem:[#allocation4 + $0x5cc] sm:$0xf0]  ;;  %v3604_v58 = vor.u32 %v4229_v46, %v3603_v45  ;;  %v383_v37 = vld [vmem:[%s4825_s9 + $0x78] sm:$0xff]  ;;  %v3032_v40 = vor.u32 %v4083_v30, %v3029_v31 }
  0x5c   : > { %1680 = vmatpush.bf16.msrb.mxu2 %v3096_v44  ;;  %v3587_v61 = vld [vmem:[#allocation4 + $0x4c0] sm:$0xf]  ;;  %v4225_v62 = vld [vmem:[#allocation4 + $0x4cc] sm:$0xf0]  ;;  %1661 = vmatpush.bf16.msrb.mxu1 %v3732_v49  ;;  %v3716_v0 = vor.u32 %v4257_v56, %v3715_v55  ;;  %v4115_v43 = vld [vmem:[#allocation4 + $0x164] sm:$0xf]  ;;  %v4873_v56 = vpack.c.bf16 %v389_v38, %v383_v37 }
  0x5d   : > { %1612 = vmatmul.bf16.vlgmr.msra.gmra.mxu2 %v4851_v54  ;;  %v3699_v4 = vld [vmem:[#allocation4 + $0x5a0] sm:$0xf]  ;;  %v4253_v5 = vld [vmem:[#allocation4 + $0x5ac] sm:$0xf0]  ;;  %1631 = vmatmul.bf16.vlgmr.msra.gmra.mxu3 %v4853_v57  ;;  %v3588_v6 = vor.u32 %v4225_v62, %v3587_v61  ;;  %v3157_v46 = vld [vmem:[#allocation4 + $0x170] sm:$0xf0] }
  0x5e   : > { %1642 = vmatpush.bf16.msrb.mxu0 %v3604_v58  ;;  %1699 = vmatpush.bf16.msrb.mxu3 %v3224_v59  ;;  %v3571_v9 = vld [vmem:[#allocation4 + $0x4a0] sm:$0xf]  ;;  %v4221_v10 = vld [vmem:[#allocation4 + $0x4ac] sm:$0xf0]  ;;  %v3700_v12 = vor.u32 %v4253_v5, %v3699_v4  ;;  %v4079_v47 = vld [vmem:[#allocation4 + $0x44] sm:$0xf]  ;;  %v3160_v59 = vor.u32 %v4115_v43, %v3157_v46 }
  0x5f   : > { %v3683_v16 = vld [vmem:[#allocation4 + $0x580] sm:$0xf]  ;;  %v4249_v17 = vld [vmem:[#allocation4 + $0x58c] sm:$0xf0]  ;;  %v3572_v18 = vor.u32 %v4221_v10, %v3571_v9  ;;  %v3013_v49 = vld [vmem:[#allocation4 + $0x50] sm:$0xf0] }
  0x60   : > { %1681 = vmatpush.bf16.msrb.mxu2 %v3080_v60  ;;  %1662 = vmatpush.bf16.msrb.mxu1 %v3716_v0  ;;  %v3555_v19 = vld [vmem:[#allocation4 + $0x480] sm:$0xf]  ;;  %v4217_v20 = vld [vmem:[#allocation4 + $0x48c] sm:$0xf0]  ;;  %v3684_v27 = vor.u32 %v4249_v17, %v3683_v16  ;;  %v3016_v60 = vor.u32 %v4079_v47, %v3013_v49  ;;  %v4111_v63 = vld [vmem:[#allocation4 + $0x144] sm:$0xf] }
  0x61   : > { %v380_v25 = vld [vmem:[%s4825_s9 + $0x60] sm:$0xff]  ;;  %v386_v26 = vld [vmem:[%s4825_s9 + $0x90] sm:$0xff]  ;;  %v3556_v35 = vor.u32 %v4217_v20, %v3555_v19 }
  0x62   : > { %1643 = vmatpush.bf16.msrb.mxu0 %v3588_v6  ;;  %1700 = vmatpush.bf16.msrb.mxu3 %v3208_v7  ;;  %v382_v32 = vld [vmem:[%s4825_s9 + $0x70] sm:$0xff]  ;;  %v3667_v33 = vld [vmem:[#allocation4 + $0x560] sm:$0xf]  ;;  %v4867_v44 = vpack.c.bf16 %v386_v26, %v380_v25  ;;  %v4075_v2 = vld [vmem:[#allocation4 + $0x24] sm:$0xf] }
  0x63   : > { %v4245_v34 = vld [vmem:[#allocation4 + $0x56c] sm:$0xf0]  ;;  %v388_v36 = vld [vmem:[%s4825_s9 + $0xa0] sm:$0xff]  ;;  %v3141_v1 = vld [vmem:[#allocation4 + $0x150] sm:$0xf0] }
  0x64   : > { %1682 = vmatpush.bf16.msrb.mxu2 %v3064_v8  ;;  %1663 = vmatpush.bf16.msrb.mxu1 %v3700_v12  ;;  %v3539_v41 = vld [vmem:[#allocation4 + $0x460] sm:$0xf]  ;;  %v4213_v42 = vld [vmem:[#allocation4 + $0x46c] sm:$0xf0]  ;;  %v3668_v45 = vor.u32 %v4245_v34, %v3667_v33  ;;  %v4871_v51 = vpack.c.bf16 %v388_v36, %v382_v32  ;;  %v2997_v3 = vld [vmem:[#allocation4 + $0x30] sm:$0xf0]  ;;  %v3144_v8 = vor.u32 %v4111_v63, %v3141_v1 }
  0x65   : > { %v3651_v52 = vld [vmem:[#allocation4 + $0x540] sm:$0xf]  ;;  %v4241_v55 = vld [vmem:[#allocation4 + $0x54c] sm:$0xf0]  ;;  %v3540_v58 = vor.u32 %v4213_v42, %v3539_v41  ;;  %v3000_v9 = vor.u32 %v4075_v2, %v2997_v3  ;;  %v4107_v11 = vld [vmem:[#allocation4 + $0x124] sm:$0xf] }
  0x66   : > { %1644 = vmatpush.bf16.msrb.mxu0 %v3572_v18  ;;  %1701 = vmatpush.bf16.msrb.mxu3 %v3192_v22  ;;  %v3523_v61 = vld [vmem:[#allocation4 + $0x440] sm:$0xf]  ;;  %v4209_v62 = vld [vmem:[#allocation4 + $0x44c] sm:$0xf0]  ;;  %v3652_v0 = vor.u32 %v4241_v55, %v3651_v52  ;;  %v3125_v12 = vld [vmem:[#allocation4 + $0x130] sm:$0xf0] }
  0x67   : > { %v3635_v4 = vld [vmem:[#allocation4 + $0x520] sm:$0xf]  ;;  %v4237_v5 = vld [vmem:[#allocation4 + $0x52c] sm:$0xf0]  ;;  %v3524_v6 = vor.u32 %v4209_v62, %v3523_v61  ;;  %v4071_v14 = vld [vmem:[#allocation4 + $0x4] sm:$0xf]  ;;  %v3128_v24 = vor.u32 %v4107_v11, %v3125_v12 }
  0x68   : > { %1683 = vmatpush.bf16.msrb.mxu2 %v3048_v23  ;;  %1664 = vmatpush.bf16.msrb.mxu1 %v3684_v27  ;;  %v3507_v7 = vld [vmem:[#allocation4 + $0x420] sm:$0xf]  ;;  %v4205_v10 = vld [vmem:[#allocation4 + $0x42c] sm:$0xf0]  ;;  %v3636_v13 = vor.u32 %v4237_v5, %v3635_v4  ;;  %v2981_v15 = vld [vmem:[#allocation4 + $0x10] sm:$0xf0] }
  0x69   : > { %v3619_v16 = vld [vmem:[#allocation4 + $0x500] sm:$0xf]  ;;  %v4233_v17 = vld [vmem:[#allocation4 + $0x50c] sm:$0xf0]  ;;  %v4227_v18 = vld [vmem:[#allocation4 + $0x4e4] sm:$0xf]  ;;  %v3508_v20 = vor.u32 %v4205_v10, %v3507_v7  ;;  %v2984_v25 = vor.u32 %v4071_v14, %v2981_v15 }
  0x6a   : > { %1645 = vmatpush.bf16.msrb.mxu0 %v3556_v35  ;;  %1702 = vmatpush.bf16.msrb.mxu3 %v3176_v39  ;;  %v3605_v19 = vld [vmem:[#allocation4 + $0x4f0] sm:$0xf0]  ;;  %v3491_v21 = vld [vmem:[#allocation4 + $0x400] sm:$0xf]  ;;  %v4195_v22 = vld [vmem:[#allocation4 + $0x3e4] sm:$0xf]  ;;  %v3620_v29 = vor.u32 %v4233_v17, %v3619_v16 }
  0x6b   : > { %1579 = vmatmul.bf16.gmra.mxu0 %v4867_v44  ;;  %1598 = vmatmul.bf16.gmra.mxu1 %v4869_v50  ;;  %v3477_v23 = vld [vmem:[#allocation4 + $0x3f0] sm:$0xf0]  ;;  %v4201_v26 = vld [vmem:[#allocation4 + $0x40c] sm:$0xf0]  ;;  %v4103_v27 = vld [vmem:[#allocation4 + $0x104] sm:$0xf]  ;;  %v3608_v31 = vor.u32 %v4227_v18, %v3605_v19 }
  0x6c   : > { %1684 = vmatpush.bf16.msrb.mxu2 %v3032_v40  ;;  %1665 = vmatpush.bf16.msrb.mxu1 %v3668_v45  ;;  %v3109_v28 = vld [vmem:[#allocation4 + $0x110] sm:$0xf0]  ;;  %v372_v30 = vld [vmem:[%s4825_s9 + $0x20] sm:$0xff]  ;;  %v3480_v35 = vor.u32 %v4195_v22, %v3477_v23  ;;  %v3492_v39 = vor.u32 %v4201_v26, %v3491_v21  ;;  %v373_v41 = vld [vmem:[%s4825_s9 + $0x28] sm:$0xff] }
  0x6d   : > { %1617 = vmatmul.bf16.gmra.mxu2 %v4871_v51  ;;  %1636 = vmatmul.bf16.gmra.mxu3 %v4873_v56  ;;  %v4163_v32 = vld [vmem:[#allocation4 + $0x2e4] sm:$0xf]  ;;  %v3349_v33 = vld [vmem:[#allocation4 + $0x2f0] sm:$0xf0]  ;;  %v379_v42 = vld [vmem:[%s4825_s9 + $0x58] sm:$0xff]  ;;  %v3112_v43 = vor.u32 %v4103_v27, %v3109_v28 }
  0x6e   : > { %1646 = vmatpush.bf16.msrb.mxu0 %v3540_v58  ;;  %1703 = vmatpush.bf16.msrb.mxu3 %v3160_v59  ;;  %v4259_v34 = vld [vmem:[#allocation4 + $0x5e4] sm:$0xf]  ;;  %v3733_v36 = vld [vmem:[#allocation4 + $0x5f0] sm:$0xf0]  ;;  %v3352_v45 = vor.u32 %v4163_v32, %v3349_v33  ;;  %v4885_v61 = vpack.c.bf16 %v379_v42, %v373_v41 }
  0x6f   : > { %v4223_v37 = vld [vmem:[#allocation4 + $0x4c4] sm:$0xf]  ;;  %v3589_v38 = vld [vmem:[#allocation4 + $0x4d0] sm:$0xf0]  ;;  %v3736_v49 = vor.u32 %v4259_v34, %v3733_v36 }
  0x70   : > { %1685 = vmatpush.bf16.msrb.mxu2 %v3016_v60  ;;  %1666 = vmatpush.bf16.msrb.mxu1 %v3652_v0  ;;  %v378_v40 = vld [vmem:[%s4825_s9 + $0x50] sm:$0xff]  ;;  %v4159_v46 = vld [vmem:[#allocation4 + $0x2c4] sm:$0xf]  ;;  %v3592_v52 = vor.u32 %v4223_v37, %v3589_v38 }
  0x71   : > { %v3333_v47 = vld [vmem:[#allocation4 + $0x2d0] sm:$0xf0]  ;;  %v4191_v55 = vld [vmem:[#allocation4 + $0x3c4] sm:$0xf]  ;;  %v4883_v60 = vpack.c.bf16 %v378_v40, %v372_v30  ;;  %v391_v40 = vld [vmem:[%s4825_s9 + $0xb8] sm:$0xff] }
  0x72   : > { %1647 = vmatpush.bf16.msrb.mxu0 %v3524_v6  ;;  %1704 = vmatpush.bf16.msrb.mxu3 %v3144_v8  ;;  %v3461_v58 = vld [vmem:[#allocation4 + $0x3d0] sm:$0xf0]  ;;  %v4255_v59 = vld [vmem:[#allocation4 + $0x5c4] sm:$0xf]  ;;  %v3336_v1 = vor.u32 %v4159_v46, %v3333_v47 }
  0x73   : > { %v3717_v62 = vld [vmem:[#allocation4 + $0x5d0] sm:$0xf0]  ;;  %v4219_v63 = vld [vmem:[#allocation4 + $0x4a4] sm:$0xf]  ;;  %v3464_v2 = vor.u32 %v4191_v55, %v3461_v58 }
  0x74   : > { %1686 = vmatpush.bf16.msrb.mxu2 %v3000_v9  ;;  %1667 = vmatpush.bf16.msrb.mxu1 %v3636_v13  ;;  %v3573_v0 = vld [vmem:[#allocation4 + $0x4b0] sm:$0xf0]  ;;  %v4155_v3 = vld [vmem:[#allocation4 + $0x2a4] sm:$0xf]  ;;  %v3720_v5 = vor.u32 %v4255_v59, %v3717_v62 }
  0x75   : > { %v3317_v4 = vld [vmem:[#allocation4 + $0x2b0] sm:$0xf0]  ;;  %v3576_v6 = vor.u32 %v4219_v63, %v3573_v0  ;;  %v4187_v7 = vld [vmem:[#allocation4 + $0x3a4] sm:$0xf] }
  0x76   : > { %1648 = vmatpush.bf16.msrb.mxu0 %v3508_v20  ;;  %1705 = vmatpush.bf16.msrb.mxu3 %v3128_v24  ;;  %v3445_v8 = vld [vmem:[#allocation4 + $0x3b0] sm:$0xf0]  ;;  %v4251_v9 = vld [vmem:[#allocation4 + $0x5a4] sm:$0xf]  ;;  %v3320_v13 = vor.u32 %v4155_v3, %v3317_v4 }
  0x77   : > { %v3701_v10 = vld [vmem:[#allocation4 + $0x5b0] sm:$0xf0]  ;;  %v4215_v11 = vld [vmem:[#allocation4 + $0x484] sm:$0xf]  ;;  %v3448_v14 = vor.u32 %v4187_v7, %v3445_v8 }
  0x78   : > { %1687 = vmatpush.bf16.msrb.mxu2 %v2984_v25  ;;  %1668 = vmatpush.bf16.msrb.mxu1 %v3620_v29  ;;  %v3557_v12 = vld [vmem:[#allocation4 + $0x490] sm:$0xf0]  ;;  %v4151_v15 = vld [vmem:[#allocation4 + $0x284] sm:$0xf]  ;;  %v3704_v17 = vor.u32 %v4251_v9, %v3701_v10 }
  0x79   : > { %v3301_v16 = vld [vmem:[#allocation4 + $0x290] sm:$0xf0]  ;;  %v3560_v18 = vor.u32 %v4215_v11, %v3557_v12  ;;  %v4183_v19 = vld [vmem:[#allocation4 + $0x384] sm:$0xf] }
  0x7a   : > { %1649 = vmatpush.bf16.msrb.mxu0 %v3492_v39  ;;  %1706 = vmatpush.bf16.msrb.mxu3 %v3112_v43  ;;  %v3429_v20 = vld [vmem:[#allocation4 + $0x390] sm:$0xf0]  ;;  %v4247_v21 = vld [vmem:[#allocation4 + $0x584] sm:$0xf]  ;;  %v3304_v25 = vor.u32 %v4151_v15, %v3301_v16  ;;  %v385_v39 = vld [vmem:[%s4825_s9 + $0x88] sm:$0xff] }
  0x7b   : > { %1669 = vmatmul.bf16.vlgmr.msrb.gmra.mxu1 %v4885_v61  ;;  %v3685_v22 = vld [vmem:[#allocation4 + $0x590] sm:$0xf0]  ;;  %v4211_v23 = vld [vmem:[#allocation4 + $0x464] sm:$0xf]  ;;  %v3432_v26 = vor.u32 %v4183_v19, %v3429_v20  ;;  %v4897_v59 = vpack.c.bf16 %v391_v40, %v385_v39  ;;  %v3083_v40 = vld [vmem:[#allocation4 + $0xc8] sm:$0xf] }
  0x7c   : > { %1756 = vmatpush.bf16.msra.mxu2 %v3608_v31  ;;  %1737 = vmatpush.bf16.msra.mxu1 %v3480_v35  ;;  %v3541_v24 = vld [vmem:[#allocation4 + $0x470] sm:$0xf0]  ;;  %v4147_v27 = vld [vmem:[#allocation4 + $0x264] sm:$0xf]  ;;  %v3688_v29 = vor.u32 %v4247_v21, %v3685_v22 }
  0x7d   : > { %1650 = vmatmul.bf16.vlgmr.msrb.gmra.mxu0 %v4883_v60  ;;  %1688 = vmatmul.bf16.vlgmr.msrb.gmra.mxu2 %v4847_v48  ;;  %v3285_v28 = vld [vmem:[#allocation4 + $0x270] sm:$0xf0]  ;;  %v384_v30 = vld [vmem:[%s4825_s9 + $0x80] sm:$0xff]  ;;  %v3544_v31 = vor.u32 %v4211_v23, %v3541_v24 }
  0x7e   : > { %1718 = vmatpush.bf16.msra.mxu0 %v3352_v45  ;;  %1775 = vmatpush.bf16.msra.mxu3 %v3736_v49  ;;  %v4179_v32 = vld [vmem:[#allocation4 + $0x364] sm:$0xf]  ;;  %v3413_v33 = vld [vmem:[#allocation4 + $0x370] sm:$0xf0]  ;;  %v3288_v41 = vor.u32 %v4147_v27, %v3285_v28  ;;  %v4102_v27 = vld [vmem:[#allocation4 + $0xf4] sm:$0xf0] }
  0x7f   : > { %1707 = vmatmul.bf16.vlgmr.msrb.gmra.mxu3 %v4849_v53  ;;  %v4243_v34 = vld [vmem:[#allocation4 + $0x564] sm:$0xf]  ;;  %v3669_v35 = vld [vmem:[#allocation4 + $0x570] sm:$0xf0]  ;;  %v3416_v42 = vor.u32 %v4179_v32, %v3413_v33  ;;  %v3227_v28 = vld [vmem:[#allocation4 + $0x1e8] sm:$0xf] }
  0x80   : > { %1757 = vmatpush.bf16.msra.mxu2 %v3592_v52  ;;  %1738 = vmatpush.bf16.msra.mxu1 %v3464_v2  ;;  %v4207_v36 = vld [vmem:[#allocation4 + $0x444] sm:$0xf]  ;;  %v3525_v37 = vld [vmem:[#allocation4 + $0x450] sm:$0xf0]  ;;  %v3672_v46 = vor.u32 %v4243_v34, %v3669_v35  ;;  %v3339_v34 = vld [vmem:[#allocation4 + $0x2c8] sm:$0xf] }
  0x81   : > { %v390_v38 = vld [vmem:[%s4825_s9 + $0xb0] sm:$0xff]  ;;  %v4143_v43 = vld [vmem:[#allocation4 + $0x244] sm:$0xf]  ;;  %v3528_v47 = vor.u32 %v4207_v36, %v3525_v37  ;;  %v4162_v35 = vld [vmem:[#allocation4 + $0x2d4] sm:$0xf0] }
  0x82   : > { %1719 = vmatpush.bf16.msra.mxu0 %v3336_v1  ;;  %1776 = vmatpush.bf16.msra.mxu3 %v3720_v5  ;;  %v3269_v45 = vld [vmem:[#allocation4 + $0x250] sm:$0xf0]  ;;  %v4175_v49 = vld [vmem:[#allocation4 + $0x344] sm:$0xf]  ;;  %v4895_v58 = vpack.c.bf16 %v390_v38, %v384_v30  ;;  %v3483_v30 = vld [vmem:[#allocation4 + $0x3e8] sm:$0xf] }
  0x83   : > { %v3397_v52 = vld [vmem:[#allocation4 + $0x350] sm:$0xf0]  ;;  %v4239_v55 = vld [vmem:[#allocation4 + $0x544] sm:$0xf]  ;;  %v3272_v1 = vor.u32 %v4143_v43, %v3269_v45  ;;  %v3211_v43 = vld [vmem:[#allocation4 + $0x1c8] sm:$0xf] }
  0x84   : > { %1758 = vmatpush.bf16.msra.mxu2 %v3576_v6  ;;  %1739 = vmatpush.bf16.msra.mxu1 %v3448_v14  ;;  %v3653_v62 = vld [vmem:[#allocation4 + $0x550] sm:$0xf0]  ;;  %v4203_v63 = vld [vmem:[#allocation4 + $0x424] sm:$0xf]  ;;  %v3400_v2 = vor.u32 %v4175_v49, %v3397_v52  ;;  %v4166_v14 = vld [vmem:[#allocation4 + $0x2f4] sm:$0xf0] }
  0x85   : > { %v3509_v0 = vld [vmem:[#allocation4 + $0x430] sm:$0xf0]  ;;  %v4139_v3 = vld [vmem:[#allocation4 + $0x224] sm:$0xf]  ;;  %v3656_v5 = vor.u32 %v4239_v55, %v3653_v62  ;;  %v4130_v45 = vld [vmem:[#allocation4 + $0x1d4] sm:$0xf0] }
  0x86   : > { %1720 = vmatpush.bf16.msra.mxu0 %v3320_v13  ;;  %1777 = vmatpush.bf16.msra.mxu3 %v3704_v17  ;;  %v3253_v4 = vld [vmem:[#allocation4 + $0x230] sm:$0xf0]  ;;  %v3512_v6 = vor.u32 %v4203_v63, %v3509_v0  ;;  %v4171_v7 = vld [vmem:[#allocation4 + $0x324] sm:$0xf]  ;;  %v3355_v13 = vld [vmem:[#allocation4 + $0x2e8] sm:$0xf]  ;;  %v3212_v0 = vor.u32 %v4130_v45, %v3211_v43 }
  0x87   : > { %v3381_v8 = vld [vmem:[#allocation4 + $0x330] sm:$0xf0]  ;;  %v4235_v9 = vld [vmem:[#allocation4 + $0x524] sm:$0xf]  ;;  %v3256_v15 = vor.u32 %v4139_v3, %v3253_v4  ;;  %v4194_v49 = vld [vmem:[#allocation4 + $0x3d4] sm:$0xf0] }
  0x88   : > { %1759 = vmatpush.bf16.msra.mxu2 %v3560_v18  ;;  %1740 = vmatpush.bf16.msra.mxu1 %v3432_v26  ;;  %v3637_v10 = vld [vmem:[#allocation4 + $0x530] sm:$0xf0]  ;;  %v4199_v11 = vld [vmem:[#allocation4 + $0x404] sm:$0xf]  ;;  %v3384_v16 = vor.u32 %v4171_v7, %v3381_v8  ;;  %v3099_v26 = vld [vmem:[#allocation4 + $0xe8] sm:$0xf] }
  0x89   : > { %v3493_v12 = vld [vmem:[#allocation4 + $0x410] sm:$0xf0]  ;;  %v4135_v17 = vld [vmem:[#allocation4 + $0x204] sm:$0xf]  ;;  %v3640_v20 = vor.u32 %v4235_v9, %v3637_v10  ;;  %v3100_v37 = vor.u32 %v4102_v27, %v3099_v26  ;;  %v3323_v52 = vld [vmem:[#allocation4 + $0x2a8] sm:$0xf] }
  0x8a   : > { %1721 = vmatpush.bf16.msra.mxu0 %v3304_v25  ;;  %1778 = vmatpush.bf16.msra.mxu3 %v3688_v29  ;;  %v3237_v18 = vld [vmem:[#allocation4 + $0x210] sm:$0xf0]  ;;  %v4167_v19 = vld [vmem:[#allocation4 + $0x304] sm:$0xf]  ;;  %v3496_v21 = vor.u32 %v4199_v11, %v3493_v12  ;;  %v3356_v25 = vor.u32 %v4166_v14, %v3355_v13  ;;  %v4134_v29 = vld [vmem:[#allocation4 + $0x1f4] sm:$0xf0] }
  0x8b   : > { %1674 = vmatmul.bf16.gmra.mxu1 %v4897_v59  ;;  %v3365_v22 = vld [vmem:[#allocation4 + $0x310] sm:$0xf0]  ;;  %v4231_v23 = vld [vmem:[#allocation4 + $0x504] sm:$0xf]  ;;  %v3240_v32 = vor.u32 %v4135_v17, %v3237_v18  ;;  %v3228_v38 = vor.u32 %v4134_v29, %v3227_v28  ;;  %v4158_v55 = vld [vmem:[#allocation4 + $0x2b4] sm:$0xf0] }
  0x8c   : > { %1760 = vmatpush.bf16.msra.mxu2 %v3544_v31  ;;  %1741 = vmatpush.bf16.msra.mxu1 %v3416_v42  ;;  %v3621_v24 = vld [vmem:[#allocation4 + $0x510] sm:$0xf0]  ;;  %v4198_v31 = vld [vmem:[#allocation4 + $0x3f4] sm:$0xf0]  ;;  %v3368_v33 = vor.u32 %v4167_v19, %v3365_v22  ;;  %v3340_v42 = vor.u32 %v4162_v35, %v3339_v34  ;;  %v3067_v62 = vld [vmem:[#allocation4 + $0xa8] sm:$0xf]  ;;  %v3324_v4 = vor.u32 %v4158_v55, %v3323_v52 }
  0x8d   : > { %1655 = vmatmul.bf16.gmra.mxu0 %v4895_v58  ;;  %1693 = vmatmul.bf16.gmra.mxu2 %v4867_v44  ;;  %v3624_v36 = vor.u32 %v4231_v23, %v3621_v24  ;;  %v3484_v39 = vor.u32 %v4198_v31, %v3483_v30  ;;  %v4094_v63 = vld [vmem:[#allocation4 + $0xb4] sm:$0xf0]  ;;  %v3307_v8 = vld [vmem:[#allocation4 + $0x288] sm:$0xf] }
  0x8e   : > { %1722 = vmatpush.bf16.msra.mxu0 %v3288_v41  ;;  %1779 = vmatpush.bf16.msra.mxu3 %v3672_v46  ;;  %v4098_v41 = vld [vmem:[#allocation4 + $0xd4] sm:$0xf0]  ;;  %v3051_v10 = vld [vmem:[#allocation4 + $0x88] sm:$0xf] }
  0x8f   : > { %1712 = vmatmul.bf16.gmra.mxu3 %v4869_v50  ;;  %v3084_v46 = vor.u32 %v4098_v41, %v3083_v40  ;;  %v4126_v3 = vld [vmem:[#allocation4 + $0x1b4] sm:$0xf0]  ;;  %v3179_v14 = vld [vmem:[#allocation4 + $0x188] sm:$0xf] }
  0x90   : > { %1761 = vmatpush.bf16.msra.mxu2 %v3528_v47  ;;  %1742 = vmatpush.bf16.msra.mxu1 %v3400_v2  ;;  %v3467_v47 = vld [vmem:[#allocation4 + $0x3c8] sm:$0xf]  ;;  %v4190_v7 = vld [vmem:[#allocation4 + $0x3b4] sm:$0xf0] }
  0x91   : > { %v3195_v2 = vld [vmem:[#allocation4 + $0x1a8] sm:$0xf]  ;;  %v4154_v9 = vld [vmem:[#allocation4 + $0x294] sm:$0xf0] }
  0x92   : > { %1723 = vmatpush.bf16.msra.mxu0 %v3272_v1  ;;  %1780 = vmatpush.bf16.msra.mxu3 %v3656_v5  ;;  %v3468_v1 = vor.u32 %v4194_v49, %v3467_v47  ;;  %v3068_v5 = vor.u32 %v4094_v63, %v3067_v62  ;;  %v4090_v11 = vld [vmem:[#allocation4 + $0x94] sm:$0xf0]  ;;  %v3196_v12 = vor.u32 %v4126_v3, %v3195_v2  ;;  %v3435_v18 = vld [vmem:[#allocation4 + $0x388] sm:$0xf] }
  0x93   : > { %v3052_v17 = vor.u32 %v4090_v11, %v3051_v10  ;;  %v4186_v19 = vld [vmem:[#allocation4 + $0x394] sm:$0xf0]  ;;  %v3035_v22 = vld [vmem:[#allocation4 + $0x68] sm:$0xf] }
  0x94   : > { %1762 = vmatpush.bf16.msra.mxu2 %v3512_v6  ;;  %1743 = vmatpush.bf16.msra.mxu1 %v3384_v16  ;;  %v3451_v6 = vld [vmem:[#allocation4 + $0x3a8] sm:$0xf]  ;;  %v3308_v16 = vor.u32 %v4154_v9, %v3307_v8  ;;  %v4086_v23 = vld [vmem:[#allocation4 + $0x74] sm:$0xf0]  ;;  %v4100_v8 = vld [vmem:[#allocation4 + $0xec] sm:$0xf] }
  0x95   : > { %v3452_v13 = vor.u32 %v4190_v7, %v3451_v6  ;;  %v3163_v26 = vld [vmem:[#allocation4 + $0x168] sm:$0xf]  ;;  %v4118_v27 = vld [vmem:[#allocation4 + $0x174] sm:$0xf0]  ;;  %v3036_v29 = vor.u32 %v4086_v23, %v3035_v22  ;;  %v3101_v9 = vld [vmem:[#allocation4 + $0xf8] sm:$0xf0] }
  0x96   : > { %1724 = vmatpush.bf16.msra.mxu0 %v3256_v15  ;;  %1781 = vmatpush.bf16.msra.mxu3 %v3640_v20  ;;  %v4122_v15 = vld [vmem:[#allocation4 + $0x194] sm:$0xf0]  ;;  %v3291_v20 = vld [vmem:[#allocation4 + $0x268] sm:$0xf]  ;;  %v3104_v22 = vor.u32 %v4100_v8, %v3101_v9  ;;  %v4120_v8 = vld [vmem:[#allocation4 + $0x18c] sm:$0xf] }
  0x97   : > { %v3180_v24 = vor.u32 %v4122_v15, %v3179_v14  ;;  %v3419_v30 = vld [vmem:[#allocation4 + $0x368] sm:$0xf]  ;;  %v4182_v31 = vld [vmem:[#allocation4 + $0x374] sm:$0xf0]  ;;  %v3181_v9 = vld [vmem:[#allocation4 + $0x198] sm:$0xf0] }
  0x98   : > { %1763 = vmatpush.bf16.msra.mxu2 %v3496_v21  ;;  %1744 = vmatpush.bf16.msra.mxu1 %v3368_v33  ;;  %v4150_v21 = vld [vmem:[#allocation4 + $0x274] sm:$0xf0]  ;;  %v3019_v34 = vld [vmem:[#allocation4 + $0x48] sm:$0xf] }
  0x99   : > { %v3292_v28 = vor.u32 %v4150_v21, %v3291_v20  ;;  %v4146_v33 = vld [vmem:[#allocation4 + $0x254] sm:$0xf0]  ;;  %v3259_v45 = vld [vmem:[#allocation4 + $0x228] sm:$0xf] }
  0x9a   : > { %1725 = vmatpush.bf16.msra.mxu0 %v3240_v32  ;;  %1782 = vmatpush.bf16.msra.mxu3 %v3624_v36  ;;  %v3275_v32 = vld [vmem:[#allocation4 + $0x248] sm:$0xf]  ;;  %v4082_v35 = vld [vmem:[#allocation4 + $0x54] sm:$0xf0]  ;;  %v3164_v36 = vor.u32 %v4118_v27, %v3163_v26  ;;  %v4096_v26 = vld [vmem:[#allocation4 + $0xcc] sm:$0xf] }
  0x9b   : > { %1745 = vmatmul.bf16.vlgmr.msra.gmra.mxu1 %v4853_v57  ;;  %v3276_v40 = vor.u32 %v4146_v33, %v3275_v32  ;;  %v3020_v41 = vor.u32 %v4082_v35, %v3019_v34  ;;  %v4178_v43 = vld [vmem:[#allocation4 + $0x354] sm:$0xf0]  ;;  %v3003_v47 = vld [vmem:[#allocation4 + $0x28] sm:$0xf]  ;;  %v3085_v27 = vld [vmem:[#allocation4 + $0xd8] sm:$0xf0] }
  0x9c   : > { %1832 = vmatpush.bf16.msrb.mxu2 %v3356_v25  ;;  %1813 = vmatpush.bf16.msrb.mxu1 %v3228_v38  ;;  %v3436_v25 = vor.u32 %v4186_v19, %v3435_v18  ;;  %v3147_v38 = vld [vmem:[#allocation4 + $0x148] sm:$0xf]  ;;  %v4078_v49 = vld [vmem:[#allocation4 + $0x34] sm:$0xf0]  ;;  %v3088_v35 = vor.u32 %v4096_v26, %v3085_v27 }
  0x9d   : > { %1726 = vmatmul.bf16.vlgmr.msra.gmra.mxu0 %v4851_v54  ;;  %1764 = vmatmul.bf16.vlgmr.msra.gmra.mxu2 %v4883_v60  ;;  %v3131_v62 = vld [vmem:[#allocation4 + $0x128] sm:$0xf]  ;;  %v4110_v63 = vld [vmem:[#allocation4 + $0x134] sm:$0xf0]  ;;  %v3004_v2 = vor.u32 %v4078_v49, %v3003_v47 }
  0x9e   : > { %1794 = vmatpush.bf16.msrb.mxu0 %v3100_v37  ;;  %1851 = vmatpush.bf16.msrb.mxu3 %v3484_v39  ;;  %v3420_v37 = vor.u32 %v4182_v31, %v3419_v30  ;;  %v4114_v39 = vld [vmem:[#allocation4 + $0x154] sm:$0xf0]  ;;  %v2987_v6 = vld [vmem:[#allocation4 + $0x8] sm:$0xf] }
  0x9f   : > { %1783 = vmatmul.bf16.vlgmr.msra.gmra.mxu3 %v4885_v61  ;;  %v3148_v52 = vor.u32 %v4114_v39, %v3147_v38  ;;  %v4174_v3 = vld [vmem:[#allocation4 + $0x334] sm:$0xf0]  ;;  %v3611_v10 = vld [vmem:[#allocation4 + $0x4e8] sm:$0xf]  ;;  %v4128_v38 = vld [vmem:[#allocation4 + $0x1cc] sm:$0xf] }
  0xa0   : > { %1833 = vmatpush.bf16.msrb.mxu2 %v3340_v42  ;;  %1814 = vmatpush.bf16.msrb.mxu1 %v3212_v0  ;;  %v3403_v42 = vld [vmem:[#allocation4 + $0x348] sm:$0xf]  ;;  %v4074_v7 = vld [vmem:[#allocation4 + $0x14] sm:$0xf0]  ;;  %v3213_v39 = vld [vmem:[#allocation4 + $0x1d8] sm:$0xf0] }
  0xa1   : > { %v3404_v55 = vor.u32 %v4178_v43, %v3403_v42  ;;  %v3387_v0 = vld [vmem:[#allocation4 + $0x328] sm:$0xf]  ;;  %v4230_v11 = vld [vmem:[#allocation4 + $0x4f4] sm:$0xf0]  ;;  %v2988_v18 = vor.u32 %v4074_v7, %v2987_v6  ;;  %v3216_v43 = vor.u32 %v4128_v38, %v3213_v39 }
  0xa2   : > { %1795 = vmatpush.bf16.msrb.mxu0 %v3084_v46  ;;  %1852 = vmatpush.bf16.msrb.mxu3 %v3468_v1  ;;  %v4142_v46 = vld [vmem:[#allocation4 + $0x234] sm:$0xf0]  ;;  %v3115_v14 = vld [vmem:[#allocation4 + $0x108] sm:$0xf]  ;;  %v3612_v23 = vor.u32 %v4230_v11, %v3611_v10 }
  0xa3   : > { %v3260_v1 = vor.u32 %v4142_v46, %v3259_v45  ;;  %v4106_v15 = vld [vmem:[#allocation4 + $0x114] sm:$0xf0]  ;;  %v3739_v20 = vld [vmem:[#allocation4 + $0x5e8] sm:$0xf] }
  0xa4   : > { %1834 = vmatpush.bf16.msrb.mxu2 %v3324_v4  ;;  %1815 = vmatpush.bf16.msrb.mxu1 %v3196_v12  ;;  %v3243_v4 = vld [vmem:[#allocation4 + $0x208] sm:$0xf]  ;;  %v3132_v12 = vor.u32 %v4110_v63, %v3131_v62  ;;  %v4170_v19 = vld [vmem:[#allocation4 + $0x314] sm:$0xf0]  ;;  %v3116_v30 = vor.u32 %v4106_v15, %v3115_v14  ;;  %v3184_v15 = vor.u32 %v4120_v8, %v3181_v9  ;;  %v4164_v8 = vld [vmem:[#allocation4 + $0x2ec] sm:$0xf] }
  0xa5   : > { %v4262_v21 = vld [vmem:[#allocation4 + $0x5f4] sm:$0xf0]  ;;  %v3723_v34 = vld [vmem:[#allocation4 + $0x5c8] sm:$0xf]  ;;  %v3357_v9 = vld [vmem:[#allocation4 + $0x2f8] sm:$0xf0] }
  0xa6   : > { %1796 = vmatpush.bf16.msrb.mxu0 %v3068_v5  ;;  %1853 = vmatpush.bf16.msrb.mxu3 %v3452_v13  ;;  %v4138_v5 = vld [vmem:[#allocation4 + $0x214] sm:$0xf0]  ;;  %v3388_v13 = vor.u32 %v4174_v3, %v3387_v0  ;;  %v3740_v32 = vor.u32 %v4262_v21, %v3739_v20  ;;  %v3579_v45 = vld [vmem:[#allocation4 + $0x4a8] sm:$0xf]  ;;  %v4088_v0 = vld [vmem:[#allocation4 + $0x8c] sm:$0xf] }
  0xa7   : > { %v4222_v46 = vld [vmem:[#allocation4 + $0x4b4] sm:$0xf0]  ;;  %v3707_v47 = vld [vmem:[#allocation4 + $0x5a8] sm:$0xf]  ;;  %v4116_v20 = vld [vmem:[#allocation4 + $0x16c] sm:$0xf] }
  0xa8   : > { %1835 = vmatpush.bf16.msrb.mxu2 %v3308_v16  ;;  %1816 = vmatpush.bf16.msrb.mxu1 %v3180_v24  ;;  %v3371_v16 = vld [vmem:[#allocation4 + $0x308] sm:$0xf]  ;;  %v4132_v24 = vld [vmem:[#allocation4 + $0x1ec] sm:$0xf]  ;;  %v4254_v49 = vld [vmem:[#allocation4 + $0x5b4] sm:$0xf0]  ;;  %v3580_v63 = vor.u32 %v4222_v46, %v3579_v45 }
  0xa9   : > { %v3372_v31 = vor.u32 %v4170_v19, %v3371_v16  ;;  %v3691_v6 = vld [vmem:[#allocation4 + $0x588] sm:$0xf]  ;;  %v4250_v7 = vld [vmem:[#allocation4 + $0x594] sm:$0xf0]  ;;  %v3165_v21 = vld [vmem:[#allocation4 + $0x178] sm:$0xf0] }
  0xaa   : > { %1797 = vmatpush.bf16.msrb.mxu0 %v3052_v17  ;;  %1854 = vmatpush.bf16.msrb.mxu3 %v3436_v25  ;;  %v3244_v17 = vor.u32 %v4138_v5, %v3243_v4  ;;  %v3229_v25 = vld [vmem:[#allocation4 + $0x1f8] sm:$0xf0]  ;;  %v3563_v4 = vld [vmem:[#allocation4 + $0x488] sm:$0xf]  ;;  %v4218_v5 = vld [vmem:[#allocation4 + $0x494] sm:$0xf0]  ;;  %v3692_v14 = vor.u32 %v4250_v7, %v3691_v6  ;;  %v3168_v27 = vor.u32 %v4116_v20, %v3165_v21 }
  0xab   : > { %1750 = vmatmul.bf16.gmra.mxu1 %v4873_v56  ;;  %v3232_v33 = vor.u32 %v4132_v24, %v3229_v25  ;;  %v3564_v11 = vor.u32 %v4218_v5, %v3563_v4  ;;  %v3547_v16 = vld [vmem:[#allocation4 + $0x468] sm:$0xf]  ;;  %v4246_v19 = vld [vmem:[#allocation4 + $0x574] sm:$0xf0]  ;;  %v4080_v24 = vld [vmem:[#allocation4 + $0x4c] sm:$0xf] }
  0xac   : > { %1836 = vmatpush.bf16.msrb.mxu2 %v3292_v28  ;;  %1817 = vmatpush.bf16.msrb.mxu1 %v3164_v36  ;;  %v3595_v28 = vld [vmem:[#allocation4 + $0x4c8] sm:$0xf]  ;;  %v3021_v25 = vld [vmem:[#allocation4 + $0x58] sm:$0xf0]  ;;  %v4108_v45 = vld [vmem:[#allocation4 + $0x12c] sm:$0xf] }
  0xad   : > { %1731 = vmatmul.bf16.gmra.mxu0 %v4871_v51  ;;  %1769 = vmatmul.bf16.gmra.mxu2 %v4895_v58  ;;  %v3133_v46 = vld [vmem:[#allocation4 + $0x138] sm:$0xf0]  ;;  %v4104_v4 = vld [vmem:[#allocation4 + $0x10c] sm:$0xf] }
  0xae   : > { %1798 = vmatpush.bf16.msrb.mxu0 %v3036_v29  ;;  %1855 = vmatpush.bf16.msrb.mxu3 %v3420_v37  ;;  %v4226_v29 = vld [vmem:[#allocation4 + $0x4d4] sm:$0xf0]  ;;  %v3117_v5 = vld [vmem:[#allocation4 + $0x118] sm:$0xf0]  ;;  %v4228_v6 = vld [vmem:[#allocation4 + $0x4ec] sm:$0xf] }
  0xaf   : > { %1788 = vmatmul.bf16.gmra.mxu3 %v4897_v59  ;;  %v3596_v36 = vor.u32 %v4226_v29, %v3595_v28  ;;  %v4258_v37 = vld [vmem:[#allocation4 + $0x5d4] sm:$0xf0]  ;;  %v3531_v28 = vld [vmem:[#allocation4 + $0x448] sm:$0xf]  ;;  %v3613_v7 = vld [vmem:[#allocation4 + $0x4f8] sm:$0xf0] }
  0xb0   : > { %1837 = vmatpush.bf16.msrb.mxu2 %v3276_v40  ;;  %1818 = vmatpush.bf16.msrb.mxu1 %v3148_v52  ;;  %v4092_v40 = vld [vmem:[#allocation4 + $0xac] sm:$0xf]  ;;  %v3724_v42 = vor.u32 %v4258_v37, %v3723_v34  ;;  %v4210_v29 = vld [vmem:[#allocation4 + $0x454] sm:$0xf0]  ;;  %v3024_v34 = vor.u32 %v4080_v24, %v3021_v25  ;;  %v3005_v37 = vld [vmem:[#allocation4 + $0x38] sm:$0xf0] }
  0xb1   : > { %v4124_v52 = vld [vmem:[#allocation4 + $0x1ac] sm:$0xf]  ;;  %v3597_v21 = vld [vmem:[#allocation4 + $0x4d8] sm:$0xf0] }
  0xb2   : > { %1799 = vmatpush.bf16.msrb.mxu0 %v3020_v41  ;;  %1856 = vmatpush.bf16.msrb.mxu3 %v3404_v55  ;;  %v3069_v41 = vld [vmem:[#allocation4 + $0xb8] sm:$0xf0]  ;;  %v4224_v20 = vld [vmem:[#allocation4 + $0x4cc] sm:$0xf] }
  0xb3   : > { %v3197_v55 = vld [vmem:[#allocation4 + $0x1b8] sm:$0xf0]  ;;  %v3072_v62 = vor.u32 %v4092_v40, %v3069_v41  ;;  %v3515_v40 = vld [vmem:[#allocation4 + $0x428] sm:$0xf]  ;;  %v4206_v41 = vld [vmem:[#allocation4 + $0x434] sm:$0xf0] }
  0xb4   : > { %1838 = vmatpush.bf16.msrb.mxu2 %v3260_v1  ;;  %1819 = vmatpush.bf16.msrb.mxu1 %v3132_v12  ;;  %v3053_v1 = vld [vmem:[#allocation4 + $0x98] sm:$0xf0]  ;;  %v3200_v3 = vor.u32 %v4124_v52, %v3197_v55  ;;  %v4084_v12 = vld [vmem:[#allocation4 + $0x6c] sm:$0xf]  ;;  %v3516_v52 = vor.u32 %v4206_v41, %v3515_v40 }
  0xb5   : > { %v3056_v10 = vor.u32 %v4088_v0, %v3053_v1  ;;  %v2989_v55 = vld [vmem:[#allocation4 + $0x18] sm:$0xf0]  ;;  %v3136_v1 = vor.u32 %v4108_v45, %v3133_v46  ;;  %v4160_v24 = vld [vmem:[#allocation4 + $0x2cc] sm:$0xf] }
  0xb6   : > { %1800 = vmatpush.bf16.msrb.mxu0 %v3004_v2  ;;  %1857 = vmatpush.bf16.msrb.mxu3 %v3388_v13  ;;  %v3708_v2 = vor.u32 %v4254_v49, %v3707_v47  ;;  %v3037_v13 = vld [vmem:[#allocation4 + $0x78] sm:$0xf0]  ;;  %v4072_v47 = vld [vmem:[#allocation4 + $0xc] sm:$0xf] }
  0xb7   : > { %v3341_v25 = vld [vmem:[#allocation4 + $0x2d8] sm:$0xf0]  ;;  %v4252_v41 = vld [vmem:[#allocation4 + $0x5ac] sm:$0xf] }
  0xb8   : > { %1839 = vmatpush.bf16.msrb.mxu2 %v3244_v17  ;;  %1820 = vmatpush.bf16.msrb.mxu1 %v3116_v30  ;;  %v4214_v17 = vld [vmem:[#allocation4 + $0x474] sm:$0xf0]  ;;  %v3659_v30 = vld [vmem:[#allocation4 + $0x548] sm:$0xf]  ;;  %v3453_v40 = vld [vmem:[#allocation4 + $0x3b8] sm:$0xf0] }
  0xba   : > { %1801 = vmatpush.bf16.msrb.mxu0 %v2988_v18  ;;  %1858 = vmatpush.bf16.msrb.mxu3 %v3372_v31  ;;  %v3675_v18 = vld [vmem:[#allocation4 + $0x568] sm:$0xf]  ;;  %v4242_v31 = vld [vmem:[#allocation4 + $0x554] sm:$0xf0] }
  0xbb   : > { %1821 = vmatmul.bf16.vlgmr.msrb.gmra.mxu1 %v4849_v53  ;;  %v3676_v26 = vor.u32 %v4246_v19, %v3675_v18  ;;  %v3660_v38 = vor.u32 %v4242_v31, %v3659_v30  ;;  %v3616_v18 = vor.u32 %v4228_v6, %v3613_v7  ;;  %v3360_v19 = vor.u32 %v4164_v8, %v3357_v9  ;;  %v4212_v6 = vld [vmem:[#allocation4 + $0x46c] sm:$0xf]  ;;  %v3549_v7 = vld [vmem:[#allocation4 + $0x478] sm:$0xf0] }
  0xbc   : > { %1908 = vmatpush.bf16.msra.mxu2 %v3104_v22  ;;  %1889 = vmatpush.bf16.msra.mxu1 %v3740_v32  ;;  %v3040_v22 = vor.u32 %v4084_v12, %v3037_v13  ;;  %v4112_v32 = vld [vmem:[#allocation4 + $0x14c] sm:$0xf]  ;;  %v3485_v13 = vld [vmem:[#allocation4 + $0x3f8] sm:$0xf0]  ;;  %v3600_v30 = vor.u32 %v4224_v20, %v3597_v21  ;;  %v3344_v31 = vor.u32 %v4160_v24, %v3341_v25 }
  0xbd   : > { %1802 = vmatmul.bf16.vlgmr.msrb.gmra.mxu0 %v4847_v48  ;;  %1840 = vmatmul.bf16.vlgmr.msrb.gmra.mxu2 %v4851_v54  ;;  %v4208_v20 = vld [vmem:[#allocation4 + $0x44c] sm:$0xf]  ;;  %v3533_v21 = vld [vmem:[#allocation4 + $0x458] sm:$0xf0] }
  0xbe   : > { %1870 = vmatpush.bf16.msra.mxu0 %v3612_v23  ;;  %1927 = vmatpush.bf16.msra.mxu3 %v3232_v33  ;;  %v3548_v23 = vor.u32 %v4214_v17, %v3547_v16  ;;  %v3149_v33 = vld [vmem:[#allocation4 + $0x158] sm:$0xf0]  ;;  %v3120_v17 = vor.u32 %v4104_v4, %v3117_v5  ;;  %v4144_v24 = vld [vmem:[#allocation4 + $0x24c] sm:$0xf] }
  0xbf   : > { %1859 = vmatmul.bf16.vlgmr.msrb.gmra.mxu3 %v4853_v57  ;;  %v3152_v39 = vor.u32 %v4112_v32, %v3149_v33  ;;  %v3277_v25 = vld [vmem:[#allocation4 + $0x258] sm:$0xf0] }
  0xc0   : > { %1909 = vmatpush.bf16.msra.mxu2 %v3088_v35  ;;  %1890 = vmatpush.bf16.msra.mxu1 %v3724_v42  ;;  %v3532_v35 = vor.u32 %v4210_v29, %v3531_v28  ;;  %v3643_v42 = vld [vmem:[#allocation4 + $0x528] sm:$0xf]  ;;  %v4256_v28 = vld [vmem:[#allocation4 + $0x5cc] sm:$0xf]  ;;  %v3725_v29 = vld [vmem:[#allocation4 + $0x5d8] sm:$0xf0] }
  0xc1   : > { %v3728_v33 = vor.u32 %v4256_v28, %v3725_v29  ;;  %v4240_v28 = vld [vmem:[#allocation4 + $0x54c] sm:$0xf]  ;;  %v3661_v29 = vld [vmem:[#allocation4 + $0x558] sm:$0xf0] }
  0xc2   : > { %1871 = vmatpush.bf16.msra.mxu0 %v3596_v36  ;;  %1928 = vmatpush.bf16.msra.mxu3 %v3216_v43  ;;  %v4076_v36 = vld [vmem:[#allocation4 + $0x2c] sm:$0xf]  ;;  %v4238_v43 = vld [vmem:[#allocation4 + $0x534] sm:$0xf0] }
  0xc3   : > { %v3008_v49 = vor.u32 %v4076_v36, %v3005_v37  ;;  %v3644_v0 = vor.u32 %v4238_v43, %v3643_v42  ;;  %v4156_v36 = vld [vmem:[#allocation4 + $0x2ac] sm:$0xf]  ;;  %v3325_v37 = vld [vmem:[#allocation4 + $0x2b8] sm:$0xf0] }
  0xc4   : > { %1910 = vmatpush.bf16.msra.mxu2 %v3072_v62  ;;  %1891 = vmatpush.bf16.msra.mxu1 %v3708_v2  ;;  %v3499_v62 = vld [vmem:[#allocation4 + $0x408] sm:$0xf]  ;;  %v3709_v42 = vld [vmem:[#allocation4 + $0x5b8] sm:$0xf0]  ;;  %v3328_v46 = vor.u32 %v4156_v36, %v3325_v37  ;;  %v3664_v36 = vor.u32 %v4240_v28, %v3661_v29  ;;  %v4140_v37 = vld [vmem:[#allocation4 + $0x22c] sm:$0xf] }
  0xc5   : > { %v3627_v2 = vld [vmem:[#allocation4 + $0x508] sm:$0xf]  ;;  %v3787_v29 = vld [vmem:[#allocation7 + $0x50] sm:$0xf] }
  0xc6   : > { %1872 = vmatpush.bf16.msra.mxu0 %v3580_v63  ;;  %1929 = vmatpush.bf16.msra.mxu3 %v3200_v3  ;;  %v4202_v63 = vld [vmem:[#allocation4 + $0x414] sm:$0xf0] }
  0xc7   : > { %v4234_v3 = vld [vmem:[#allocation4 + $0x514] sm:$0xf0]  ;;  %v3500_v12 = vor.u32 %v4202_v63, %v3499_v62  ;;  %v4152_v62 = vld [vmem:[#allocation4 + $0x28c] sm:$0xf]  ;;  %v3309_v63 = vld [vmem:[#allocation4 + $0x298] sm:$0xf0] }
  0xc8   : > { %1911 = vmatpush.bf16.msra.mxu2 %v3056_v10  ;;  %1892 = vmatpush.bf16.msra.mxu1 %v3692_v14  ;;  %v4196_v10 = vld [vmem:[#allocation4 + $0x3ec] sm:$0xf]  ;;  %v3628_v16 = vor.u32 %v4234_v3, %v3627_v2  ;;  %v3693_v3 = vld [vmem:[#allocation4 + $0x598] sm:$0xf0]  ;;  %v3312_v5 = vor.u32 %v4152_v62, %v3309_v63 }
  0xc9   : > { %v4260_v14 = vld [vmem:[#allocation4 + $0x5ec] sm:$0xf]  ;;  %v3501_v63 = vld [vmem:[#allocation4 + $0x418] sm:$0xf0] }
  0xca   : > { %1873 = vmatpush.bf16.msra.mxu0 %v3564_v11  ;;  %1930 = vmatpush.bf16.msra.mxu3 %v3184_v15  ;;  %v2992_v11 = vor.u32 %v4072_v47, %v2989_v55  ;;  %v3741_v15 = vld [vmem:[#allocation4 + $0x5f8] sm:$0xf0]  ;;  %v4216_v47 = vld [vmem:[#allocation4 + $0x48c] sm:$0xf]  ;;  %v3712_v55 = vor.u32 %v4252_v41, %v3709_v42 }
  0xcb   : > { %1826 = vmatmul.bf16.gmra.mxu1 %v4869_v50  ;;  %v4248_v2 = vld [vmem:[#allocation4 + $0x58c] sm:$0xf] }
  0xcc   : > { %1912 = vmatpush.bf16.msra.mxu2 %v3040_v22  ;;  %1893 = vmatpush.bf16.msra.mxu1 %v3676_v26  ;;  %v3488_v22 = vor.u32 %v4196_v10, %v3485_v13  ;;  %v4192_v26 = vld [vmem:[#allocation4 + $0x3cc] sm:$0xf]  ;;  %v3696_v10 = vor.u32 %v4248_v2, %v3693_v3  ;;  %v3245_v3 = vld [vmem:[#allocation4 + $0x218] sm:$0xf0] }
  0xcd   : > { %1807 = vmatmul.bf16.gmra.mxu0 %v4867_v44  ;;  %1845 = vmatmul.bf16.gmra.mxu2 %v4871_v51  ;;  %v4180_v13 = vld [vmem:[#allocation4 + $0x36c] sm:$0xf] }
  0xce   : > { %1874 = vmatpush.bf16.msra.mxu0 %v3548_v23  ;;  %1931 = vmatpush.bf16.msra.mxu3 %v3168_v27  ;;  %v3744_v23 = vor.u32 %v4260_v14, %v3741_v15  ;;  %v3469_v27 = vld [vmem:[#allocation4 + $0x3d8] sm:$0xf0]  ;;  %v4244_v15 = vld [vmem:[#allocation4 + $0x56c] sm:$0xf] }
  0xcf   : > { %1864 = vmatmul.bf16.gmra.mxu3 %v4873_v56  ;;  %v3472_v32 = vor.u32 %v4192_v26, %v3469_v27  ;;  %v4176_v26 = vld [vmem:[#allocation4 + $0x34c] sm:$0xf]  ;;  %v3405_v27 = vld [vmem:[#allocation4 + $0x358] sm:$0xf0] }
  0xd0   : > { %1913 = vmatpush.bf16.msra.mxu2 %v3024_v34  ;;  %1894 = vmatpush.bf16.msra.mxu1 %v3660_v38  ;;  %v4220_v34 = vld [vmem:[#allocation4 + $0x4ac] sm:$0xf] }
  0xd1   : > { %v4188_v38 = vld [vmem:[#allocation4 + $0x3ac] sm:$0xf] }
  0xd2   : > { %1875 = vmatpush.bf16.msra.mxu0 %v3532_v35  ;;  %1932 = vmatpush.bf16.msra.mxu3 %v3152_v39  ;;  %v3581_v35 = vld [vmem:[#allocation4 + $0x4b8] sm:$0xf0]  ;;  %v4200_v62 = vld [vmem:[#allocation4 + $0x40c] sm:$0xf] }
  0xd3   : > { %v3584_v45 = vor.u32 %v4220_v34, %v3581_v35  ;;  %v3408_v35 = vor.u32 %v4176_v26, %v3405_v27  ;;  %v4136_v2 = vld [vmem:[#allocation4 + $0x20c] sm:$0xf] }
  0xd4   : > { %1914 = vmatpush.bf16.msra.mxu2 %v3008_v49  ;;  %1895 = vmatpush.bf16.msra.mxu1 %v3644_v0  ;;  %v3565_v49 = vld [vmem:[#allocation4 + $0x498] sm:$0xf0]  ;;  %v4184_v0 = vld [vmem:[#allocation4 + $0x38c] sm:$0xf] }
  0xd5   : > { %v3568_v4 = vor.u32 %v4216_v47, %v3565_v49  ;;  %v3645_v47 = vld [vmem:[#allocation4 + $0x538] sm:$0xf0]  ;;  %v4292_v26 = vld [vmem:[#allocation7 + $0xe4] sm:$0xf0] }
  0xd6   : > { %1876 = vmatpush.bf16.msra.mxu0 %v3516_v52  ;;  %1933 = vmatpush.bf16.msra.mxu3 %v3136_v1  ;;  %v3456_v52 = vor.u32 %v4188_v38, %v3453_v40  ;;  %v3437_v1 = vld [vmem:[#allocation4 + $0x398] sm:$0xf0]  ;;  %v4172_v40 = vld [vmem:[#allocation4 + $0x32c] sm:$0xf] }
  0xd7   : > { %v4919_v39 = vpop.f32.mrf.mxu0  ;;  %v4921_v43 = vpop.f32.mrf.mxu1  ;;  %v3440_v9 = vor.u32 %v4184_v0, %v3437_v1  ;;  %v3261_v38 = vld [vmem:[#allocation4 + $0x238] sm:$0xf0] }
  0xd8   : > { %1915 = vmatpush.bf16.msra.mxu2 %v2992_v11  ;;  %1896 = vmatpush.bf16.msra.mxu1 %v3628_v16  ;;  %v4148_v11 = vld [vmem:[#allocation4 + $0x26c] sm:$0xf]  ;;  %v3677_v16 = vld [vmem:[#allocation4 + $0x578] sm:$0xf0] }
  0xda   : > { %1877 = vmatpush.bf16.msra.mxu0 %v3500_v12  ;;  %1934 = vmatpush.bf16.msra.mxu3 %v3120_v17  ;;  %v3293_v12 = vld [vmem:[#allocation4 + $0x278] sm:$0xf0] }
  0xdb   : > { %1897 = vmatmul.bf16.vlgmr.msra.gmra.mxu1 %v4885_v61 }
  0xdc   : > { %1984 = vmatpush.bf16.msrb.mxu2 %v3616_v18  ;;  %1965 = vmatpush.bf16.msrb.mxu1 %v3488_v22  ;;  %v3552_v18 = vor.u32 %v4212_v6, %v3549_v7  ;;  %v4232_v6 = vld [vmem:[#allocation4 + $0x50c] sm:$0xf]  ;;  %v3629_v7 = vld [vmem:[#allocation4 + $0x518] sm:$0xf0] }
  0xdd   : > { %1878 = vmatmul.bf16.vlgmr.msra.gmra.mxu0 %v4883_v60  ;;  %1916 = vmatmul.bf16.vlgmr.msra.gmra.mxu2 %v4847_v48 }
  0xde   : > { %1946 = vmatpush.bf16.msrb.mxu0 %v3360_v19  ;;  %2003 = vmatpush.bf16.msrb.mxu3 %v3744_v23  ;;  %v3296_v19 = vor.u32 %v4148_v11, %v3293_v12  ;;  %v3680_v23 = vor.u32 %v4244_v15, %v3677_v16  ;;  %v3504_v11 = vor.u32 %v4200_v62, %v3501_v63  ;;  %v3867_v16 = vld [vmem:[#allocation7 + $0xf0] sm:$0xf] }
  0xdf   : > { %1935 = vmatmul.bf16.vlgmr.msra.gmra.mxu3 %v4849_v53  ;;  %v4931_v48 = vpop.f32.mrf.mxu0  ;;  %v3421_v53 = vld [vmem:[#allocation4 + $0x378] sm:$0xf0]  ;;  %v4933_v17 = vpop.f32.mrf.mxu1  ;;  %v3248_v12 = vor.u32 %v4136_v2, %v3245_v3  ;;  %v3632_v15 = vor.u32 %v4232_v6, %v3629_v7  ;;  %v3771_v63 = vld [vmem:[#allocation7 + $0x30] sm:$0xf]  ;;  %v3763_v7 = vld [vmem:[#allocation7 + $0x20] sm:$0xf] }
  0xe0   : > { %1985 = vmatpush.bf16.msrb.mxu2 %v3600_v30  ;;  %1966 = vmatpush.bf16.msrb.mxu1 %v3472_v32  ;;  %v4927_v8 = vpop.f32.mrf.mxu2  ;;  %v4929_v14 = vpop.f32.mrf.mxu3  ;;  %v3424_v22 = vor.u32 %v4180_v13, %v3421_v53  ;;  %v3536_v30 = vor.u32 %v4208_v20, %v3533_v21  ;;  %v4204_v32 = vld [vmem:[#allocation4 + $0x42c] sm:$0xf]  ;;  %v4294_v20 = vld [vmem:[#allocation7 + $0xf4] sm:$0xf0]  ;;  %v3795_v21 = vld [vmem:[#allocation7 + $0x60] sm:$0xf] }
  0xe1   : > { %v3835_v2 = vld [vmem:[#allocation7 + $0xb0] sm:$0xf]  ;;  %v4286_v3 = vld [vmem:[#allocation7 + $0xb4] sm:$0xf0] }
  0xe2   : > { %1947 = vmatpush.bf16.msrb.mxu0 %v3344_v31  ;;  %2004 = vmatpush.bf16.msrb.mxu3 %v3728_v33  ;;  %v3280_v31 = vor.u32 %v4144_v24, %v3277_v25  ;;  %v3517_v33 = vld [vmem:[#allocation4 + $0x438] sm:$0xf0]  ;;  %v3859_v24 = vld [vmem:[#allocation7 + $0xe0] sm:$0xf] }
  0xe3   : > { %v3860_v27 = vor.u32 %v4292_v26, %v3859_v24 }
  0xe4   : > { %1986 = vmatpush.bf16.msrb.mxu2 %v3584_v45  ;;  %1967 = vmatpush.bf16.msrb.mxu1 %v3456_v52  ;;  %v3389_v45 = vld [vmem:[#allocation4 + $0x338] sm:$0xf0]  ;;  %v3520_v52 = vor.u32 %v4204_v32, %v3517_v33 }
  0xe5   : > { %v3392_v0 = vor.u32 %v4172_v40, %v3389_v45  ;;  %v4290_v33 = vld [vmem:[#allocation7 + $0xd4] sm:$0xf0]  ;;  %v3779_v40 = vld [vmem:[#allocation7 + $0x40] sm:$0xf] }
  0xe6   : > { %1948 = vmatpush.bf16.msrb.mxu0 %v3328_v46  ;;  %2005 = vmatpush.bf16.msrb.mxu3 %v3712_v55  ;;  %v4236_v46 = vld [vmem:[#allocation4 + $0x52c] sm:$0xf]  ;;  %v3264_v55 = vor.u32 %v4140_v37, %v3261_v38  ;;  %v4963_v37 = vld [vmem:[#allocation6] sm:$0xf] }
  0xe7   : > { %v3648_v1 = vor.u32 %v4236_v46, %v3645_v47  ;;  %v4272_v46 = vld [vmem:[#allocation7 + $0x44] sm:$0xf0]  ;;  %v3843_v47 = vld [vmem:[#allocation7 + $0xc0] sm:$0xf] }
  0xe8   : > { %1987 = vmatpush.bf16.msrb.mxu2 %v3568_v4  ;;  %1968 = vmatpush.bf16.msrb.mxu1 %v3440_v9  ;;  %v4935_v34 = vpop.f32.mrf.mxu2  ;;  %v4937_v41 = vpop.f32.mrf.mxu3  ;;  %v4168_v4 = vld [vmem:[#allocation4 + $0x30c] sm:$0xf]  ;;  %v3803_v9 = vld [vmem:[#allocation7 + $0x70] sm:$0xf]  ;;  %v3780_v62 = vor.u32 %v4272_v46, %v3779_v40 }
  0xe9   : > { %v4939_v42 = vpop.f32.mrf.mxu0  ;;  %v4941_v49 = vpop.f32.mrf.mxu1 }
  0xea   : > { %1949 = vmatpush.bf16.msrb.mxu0 %v3312_v5  ;;  %2006 = vmatpush.bf16.msrb.mxu3 %v3696_v10  ;;  %v3373_v5 = vld [vmem:[#allocation4 + $0x318] sm:$0xf0] }
  0xeb   : > { %1902 = vmatmul.bf16.gmra.mxu1 %v4897_v59  ;;  %v4278_v10 = vld [vmem:[#allocation7 + $0x74] sm:$0xf0]  ;;  %v3376_v53 = vor.u32 %v4168_v4, %v3373_v5 }
  0xec   : > { %1988 = vmatpush.bf16.msrb.mxu2 %v3552_v18  ;;  %1969 = vmatpush.bf16.msrb.mxu1 %v3424_v22  ;;  %v4276_v22 = vld [vmem:[#allocation7 + $0x64] sm:$0xf0] }
  0xed   : > { %1883 = vmatmul.bf16.gmra.mxu0 %v4895_v58  ;;  %1921 = vmatmul.bf16.gmra.mxu2 %v4867_v44  ;;  %v3804_v44 = vor.u32 %v4278_v10, %v3803_v9  ;;  %v3796_v25 = vor.u32 %v4276_v22, %v3795_v21  ;;  %v3836_v9 = vor.u32 %v4286_v3, %v3835_v2  ;;  %v4268_v10 = vld [vmem:[#allocation7 + $0x24] sm:$0xf0]  ;;  %v3819_v21 = vld [vmem:[#allocation7 + $0x90] sm:$0xf] }
  0xee   : > { %1950 = vmatpush.bf16.msrb.mxu0 %v3296_v19  ;;  %2007 = vmatpush.bf16.msrb.mxu3 %v3680_v23  ;;  %v3868_v23 = vor.u32 %v4294_v20, %v3867_v16  ;;  %v3764_v16 = vor.u32 %v4268_v10, %v3763_v7  ;;  %v4266_v20 = vld [vmem:[#allocation7 + $0x14] sm:$0xf0]  ;;  %v3789_v7 = vld [vmem:[#allocation7 + $0x58] sm:$0xf0]  ;;  %v5011_v10 = vperm.slane %v4963_v37, 1 }
  0xef   : > { %1940 = vmatmul.bf16.gmra.mxu3 %v4869_v50 }
  0xf0   : > { %1989 = vmatpush.bf16.msrb.mxu2 %v3536_v30  ;;  %1970 = vmatpush.bf16.msrb.mxu1 %v3408_v35  ;;  %v4947_v13 = vpop.f32.mrf.mxu2  ;;  %v4949_v18 = vpop.f32.mrf.mxu3  ;;  %v4274_v30 = vld [vmem:[#allocation7 + $0x54] sm:$0xf0] }
  0xf1   : > { %v4951_v19 = vpop.f32.mrf.mxu0  ;;  %v4953_v50 = vpop.f32.mrf.mxu1  ;;  %v3788_v38 = vor.u32 %v4274_v30, %v3787_v29  ;;  %v4264_v30 = vld [vmem:[#allocation7 + $0x4] sm:$0xf0] }
  0xf2   : > { %1951 = vmatpush.bf16.msrb.mxu0 %v3280_v31  ;;  %2008 = vmatpush.bf16.msrb.mxu3 %v3664_v36  ;;  %v3851_v31 = vld [vmem:[#allocation7 + $0xd0] sm:$0xf] }
  0xf3   : > { %v3852_v45 = vor.u32 %v4290_v33, %v3851_v31  ;;  %v3811_v31 = vld [vmem:[#allocation7 + $0x80] sm:$0xf]  ;;  %v4280_v33 = vld [vmem:[#allocation7 + $0x84] sm:$0xf0] }
  0xf4   : > { %1990 = vmatpush.bf16.msrb.mxu2 %v3520_v52  ;;  %1971 = vmatpush.bf16.msrb.mxu1 %v3392_v0  ;;  %v4288_v52 = vld [vmem:[#allocation7 + $0xc4] sm:$0xf0] }
  0xf5   : > { %v3844_v0 = vor.u32 %v4288_v52, %v3843_v47  ;;  %v3812_v47 = vor.u32 %v4280_v33, %v3811_v31  ;;  %v3773_v31 = vld [vmem:[#allocation7 + $0x38] sm:$0xf0] }
  0xf6   : > { %1952 = vmatpush.bf16.msrb.mxu0 %v3264_v55  ;;  %2009 = vmatpush.bf16.msrb.mxu3 %v3648_v1  ;;  %v4968_v55 = vperm.slane %v4963_v37, 0  ;;  %v4270_v1 = vld [vmem:[#allocation7 + $0x34] sm:$0xf0] }
  0xf8   : > { %1991 = vmatpush.bf16.msrb.mxu2 %v3504_v11  ;;  %1972 = vmatpush.bf16.msrb.mxu1 %v3376_v53  ;;  %v4955_v28 = vpop.f32.mrf.mxu2  ;;  %v4957_v32 = vpop.f32.mrf.mxu3  ;;  %v3827_v11 = vld [vmem:[#allocation7 + $0xa0] sm:$0xf]  ;;  %v1581_v2 = vadd.f32 %v4939_v42, %v4968_v55  ;;  %v1583_v3 = vadd.f32 %v4951_v19, %v4968_v55 }
  0xf9   : > { %v4961_v36 = vpop.f32.mrf.mxu1 }
  0xfa   : > { %1953 = vmatpush.bf16.msrb.mxu0 %v3248_v12  ;;  %2010 = vmatpush.bf16.msrb.mxu3 %v3632_v15  ;;  %v4959_v35 = vpop.f32.mrf.mxu0  ;;  %v4284_v12 = vld [vmem:[#allocation7 + $0xa4] sm:$0xf0]  ;;  %v1600_v42 = vadd.f32 %v4941_v49, %v1581_v2  ;;  %v1602_v19 = vadd.f32 %v4953_v50, %v1583_v3  ;;  %v4283_v2 = vld [vmem:[#allocation7 + $0xa4] sm:$0xf]  ;;  %v3829_v3 = vld [vmem:[#allocation7 + $0xa8] sm:$0xf0] }
  0xfb   : > { %1973 = vmatmul.bf16.vlgmr.msrb.gmra.mxu1 %v4853_v57  ;;  %v1576_v57 = vadd.f32 %v4919_v39, %v4968_v55  ;;  %v3755_v39 = vld [vmem:[#allocation7 + $0x10] sm:$0xf] }
  0xfc   : > { %2455 = vmatpush.bf16.msra.mxu1 %v3868_v23 }
  0xfd   : > { %1954 = vmatmul.bf16.vlgmr.msrb.gmra.mxu0 %v4851_v54  ;;  %1992 = vmatmul.bf16.vlgmr.msrb.gmra.mxu2 %v4883_v60  ;;  %v1578_v60 = vadd.f32 %v4931_v48, %v4968_v55  ;;  %v1595_v53 = vadd.f32 %v4921_v43, %v1576_v57  ;;  %v4282_v48 = vld [vmem:[#allocation7 + $0x94] sm:$0xf0] }
  0xfe   : > { %2436 = vmatpush.bf16.msra.mxu0 %v3804_v44  ;;  %v3828_v44 = vor.u32 %v4284_v12, %v3827_v11  ;;  %v3820_v29 = vor.u32 %v4282_v48, %v3819_v21 }
  0xff   : > { %2011 = vmatmul.bf16.vlgmr.msrb.gmra.mxu3 %v4885_v61  ;;  %v3772_v61 = vor.u32 %v4270_v1, %v3771_v63  ;;  %v1597_v15 = vadd.f32 %v4933_v17, %v1578_v60  ;;  %v3756_v17 = vor.u32 %v4266_v20, %v3755_v39  ;;  %v4275_v63 = vld [vmem:[#allocation7 + $0x64] sm:$0xf]  ;;  %v3853_v20 = vld [vmem:[#allocation7 + $0xd8] sm:$0xf0] }
 0x100   : > { %2456 = vmatpush.bf16.msra.mxu1 %v3860_v27  ;;  %v4972_v4 = vpop.f32.mrf.mxu2  ;;  %v3747_v27 = vld [vmem:[#allocation7] sm:$0xf]  ;;  %v4291_v60 = vld [vmem:[#allocation7 + $0xe4] sm:$0xf] }
 0x101   : > { %v1672_v6 = vpop.f32.mrf.mxu1  ;;  %v1616_v22 = vadd.f32 %v4935_v34, %v1597_v15  ;;  %v3748_v46 = vor.u32 %v4264_v30, %v3747_v27  ;;  %v4271_v39 = vld [vmem:[#allocation7 + $0x44] sm:$0xf]  ;;  %v1690_v49 = vadd.f32 %v4972_v4, %v5011_v10  ;;  %v3845_v27 = vld [vmem:[#allocation7 + $0xc8] sm:$0xf0]  ;;  %v4269_v30 = vld [vmem:[#allocation7 + $0x34] sm:$0xf] }
 0x102   : > { %2437 = vmatpush.bf16.msra.mxu0 %v3796_v25  ;;  %v4974_v54 = vpop.f32.mrf.mxu3  ;;  %v1653_v5 = vpop.f32.mrf.mxu0  ;;  %v1614_v25 = vadd.f32 %v4927_v8, %v1595_v53  ;;  %v3805_v8 = vld [vmem:[#allocation7 + $0x78] sm:$0xf0]  ;;  %v1621_v53 = vadd.f32 %v4955_v28, %v1602_v19  ;;  %v4287_v28 = vld [vmem:[#allocation7 + $0xc4] sm:$0xf] }
 0x103   : > { %v1635_v34 = vadd.f32 %v4937_v41, %v1616_v22  ;;  %v1619_v22 = vadd.f32 %v4947_v13, %v1600_v42  ;;  %v3848_v33 = vor.u32 %v4287_v28, %v3845_v27  ;;  %v1709_v4 = vadd.f32 %v4974_v54, %v1690_v49  ;;  %v4310_v49 = vld [vmem:[#allocation7 + $0x174] sm:$0xf0]  ;;  %v3813_v28 = vld [vmem:[#allocation7 + $0x88] sm:$0xf0] }
 0x104   : > { %2457 = vmatpush.bf16.msra.mxu1 %v3852_v45  ;;  %v1633_v40 = vadd.f32 %v4929_v14, %v1614_v25  ;;  %v3869_v14 = vld [vmem:[#allocation7 + $0xf8] sm:$0xf0] }
 0x105   : > { %v1654_v45 = vadd.f32 %v1653_v5, %v1635_v34  ;;  %v1638_v13 = vadd.f32 %v4949_v18, %v1619_v22 }
 0x106   : > { %2438 = vmatpush.bf16.msra.mxu0 %v3788_v38  ;;  %v4277_v38 = vld [vmem:[#allocation7 + $0x74] sm:$0xf]  ;;  %v1652_v52 = vadd.f32 %v4959_v35, %v1633_v40  ;;  %v3776_v40 = vor.u32 %v4269_v30, %v3773_v31 }
 0x107   : > { %v3808_v41 = vor.u32 %v4277_v38, %v3805_v8  ;;  %v1673_v35 = vadd.f32 %v1672_v6, %v1654_v45  ;;  %v4285_v45 = vld [vmem:[#allocation7 + $0xb4] sm:$0xf] }
 0x108   : > { %2458 = vmatpush.bf16.msra.mxu1 %v3844_v0  ;;  %v4983_v23 = vpop.f32.mrf.mxu2  ;;  %v3797_v0 = vld [vmem:[#allocation7 + $0x68] sm:$0xf0]  ;;  %v1671_v57 = vadd.f32 %v4961_v36, %v1652_v52  ;;  %v4289_v36 = vld [vmem:[#allocation7 + $0xd4] sm:$0xf] }
 0x109   : > { %v4990_v43 = vpop.f32.mrf.mxu1  ;;  %v3800_v5 = vor.u32 %v4275_v63, %v3797_v0  ;;  %v2026_v55 = vmax.f32 %v1673_v35, 0.0  ;;  %v3856_v48 = vor.u32 %v4289_v36, %v3853_v20  ;;  %v1692_v34 = vadd.f32 %v4983_v23, %v5011_v10  ;;  %v4265_v35 = vld [vmem:[#allocation7 + $0x14] sm:$0xf]  ;;  %v3931_v20 = vld [vmem:[#allocation7 + $0x170] sm:$0xf] }
 0x10a   : > { %2439 = vmatpush.bf16.msra.mxu0 %v3780_v62  ;;  %v4985_v24 = vpop.f32.mrf.mxu3  ;;  %v4988_v26 = vpop.f32.mrf.mxu0  ;;  %v4293_v62 = vld [vmem:[#allocation7 + $0xf4] sm:$0xf]  ;;  %v2022_v6 = vmax.f32 %v1671_v57, 0.0  ;;  %v3757_v57 = vld [vmem:[#allocation7 + $0x18] sm:$0xf0] }
 0x10b   : > { %1978 = vmatmul.bf16.gmra.mxu1 %v4873_v56  ;;  %v1711_v54 = vadd.f32 %v4985_v24, %v1692_v34  ;;  %v3760_v24 = vor.u32 %v4265_v35, %v3757_v57 }
 0x10c   : > { %2459 = vmatpush.bf16.msra.mxu1 %v3836_v9  ;;  %v3861_v9 = vld [vmem:[#allocation7 + $0xe8] sm:$0xf0]  ;;  %v5023_v25 = vpack.c.bf16 %v2026_v55, %v2022_v6  ;;  %v4263_v55 = vld [vmem:[#allocation7 + $0x4] sm:$0xf] }
 0x10d   : > { %1959 = vmatmul.bf16.gmra.mxu0 %v4871_v51  ;;  %1997 = vmatmul.bf16.gmra.mxu2 %v4895_v58  ;;  %v3864_v11 = vor.u32 %v4291_v60, %v3861_v9  ;;  %v4281_v9 = vld [vmem:[#allocation7 + $0x94] sm:$0xf]  ;;  %v3749_v6 = vld [vmem:[#allocation7 + $0x8] sm:$0xf0] }
 0x10e   : > { %2440 = vmatpush.bf16.msra.mxu0 %v3772_v61  ;;  %v4273_v61 = vld [vmem:[#allocation7 + $0x54] sm:$0xf]  ;;  %v3752_v22 = vor.u32 %v4263_v55, %v3749_v6  ;;  %v4298_v55 = vld [vmem:[#allocation7 + $0x114] sm:$0xf0] }
 0x10f   : > { %2016 = vmatmul.bf16.gmra.mxu3 %v4897_v59  ;;  %v3872_v59 = vor.u32 %v4293_v62, %v3869_v14  ;;  %v3792_v12 = vor.u32 %v4273_v61, %v3789_v7  ;;  %v3765_v62 = vld [vmem:[#allocation7 + $0x28] sm:$0xf0] }
 0x110   : > { %2460 = vmatpush.bf16.msra.mxu1 %v3828_v44  ;;  %v4999_v51 = vpop.f32.mrf.mxu2  ;;  %v3781_v44 = vld [vmem:[#allocation7 + $0x48] sm:$0xf0] }
 0x111   : > { %v5003_v58 = vpop.f32.mrf.mxu1 }
 0x112   : > { %2441 = vmatpush.bf16.msra.mxu0 %v3764_v16  ;;  %v5001_v56 = vpop.f32.mrf.mxu3  ;;  %v1658_v1 = vpop.f32.mrf.mxu0 }
 0x114   : > { %2461 = vmatpush.bf16.msra.mxu1 %v3820_v29  ;;  %v1640_v29 = vadd.f32 %v4957_v32, %v1621_v53  ;;  %v1657_v32 = vadd.f32 %v4988_v26, %v1638_v13 }
 0x116   : > { %2442 = vmatpush.bf16.msra.mxu0 %v3756_v17  ;;  %v3784_v17 = vor.u32 %v4271_v39, %v3781_v44  ;;  %v1659_v38 = vadd.f32 %v1658_v1, %v1640_v29  ;;  %v1676_v26 = vadd.f32 %v4990_v43, %v1657_v32  ;;  %v1695_v43 = vadd.f32 %v4999_v51, %v5011_v10 }
 0x118   : > { %2462 = vmatpush.bf16.msra.mxu1 %v3812_v47  ;;  %v5016_v15 = vpop.f32.mrf.mxu2  ;;  %v1678_v18 = vadd.f32 %v5003_v58, %v1659_v38  ;;  %v3821_v58 = vld [vmem:[#allocation7 + $0x98] sm:$0xf0]  ;;  %v1714_v51 = vadd.f32 %v5001_v56, %v1695_v43 }
 0x119   : > { %v1746_v50 = vpop.f32.mrf.mxu1  ;;  %v1697_v29 = vadd.f32 %v5016_v15, %v5011_v10  ;;  %v3915_v10 = vld [vmem:[#allocation7 + $0x150] sm:$0xf]  ;;  %v4306_v15 = vld [vmem:[#allocation7 + $0x154] sm:$0xf0] }
 0x11a   : > { %2443 = vmatpush.bf16.msra.mxu0 %v3748_v46  ;;  %v5018_v16 = vpop.f32.mrf.mxu3  ;;  %v1727_v21 = vpop.f32.mrf.mxu0  ;;  %v3837_v46 = vld [vmem:[#allocation7 + $0xb8] sm:$0xf0]  ;;  %v2034_v61 = vmax.f32 %v1678_v18, 0.0  ;;  %v3916_v32 = vor.u32 %v4306_v15, %v3915_v10  ;;  %v4303_v10 = vld [vmem:[#allocation7 + $0x144] sm:$0xf] }
 0x11b   : > { %v1728_v8 = vadd.f32 %v1727_v21, %v1709_v4  ;;  %v3840_v63 = vor.u32 %v4285_v45, %v3837_v46  ;;  %v4308_v4 = vld [vmem:[#allocation7 + $0x164] sm:$0xf0]  ;;  %v1716_v45 = vadd.f32 %v5018_v16, %v1697_v29  ;;  %v3909_v15 = vld [vmem:[#allocation7 + $0x148] sm:$0xf0] }
 0x11c   : > { %2531 = vmatpush.bf16.msrb.mxu1 %v3872_v59 }
 0x11d   : > { %2444 = vmatmul.bf16.vlgmr.msra.gmra.mxu0 %v5023_v25  ;;  %v1747_v14 = vadd.f32 %v1746_v50, %v1728_v8  ;;  %v3932_v50 = vor.u32 %v4310_v49, %v3931_v20  ;;  %v4309_v20 = vld [vmem:[#allocation7 + $0x174] sm:$0xf]  ;;  %v3933_v49 = vld [vmem:[#allocation7 + $0x178] sm:$0xf0] }
 0x11e   : > { %2512 = vmatpush.bf16.msrb.mxu0 %v3808_v41  ;;  %v4267_v41 = vld [vmem:[#allocation7 + $0x24] sm:$0xf] }
 0x11f   : > { %v3768_v59 = vor.u32 %v4267_v41, %v3765_v62  ;;  %2474 = vmatpush.bf16.msra.mxu2 %v3932_v50  ;;  %v3907_v62 = vld [vmem:[#allocation7 + $0x140] sm:$0xf]  ;;  %v3936_v50 = vor.u32 %v4309_v20, %v3933_v49 }
 0x120   : > { %2532 = vmatpush.bf16.msrb.mxu1 %v3864_v11  ;;  %v1765_v47 = vpop.f32.mrf.mxu2  ;;  %v2030_v11 = vmax.f32 %v1676_v26, 0.0 }
 0x121   : > { %v1748_v23 = vpop.f32.mrf.mxu1  ;;  %v1766_v60 = vadd.f32 %v1765_v47, %v1747_v14 }
 0x122   : > { %2513 = vmatpush.bf16.msrb.mxu0 %v3800_v5  ;;  %v1784_v52 = vpop.f32.mrf.mxu3  ;;  %v1729_v0 = vpop.f32.mrf.mxu0  ;;  %v3832_v5 = vor.u32 %v4283_v2, %v3829_v3  ;;  %v5037_v21 = vpack.c.bf16 %v2034_v61, %v2030_v11  ;;  %v3899_v2 = vld [vmem:[#allocation7 + $0x130] sm:$0xf]  ;;  %v4302_v3 = vld [vmem:[#allocation7 + $0x134] sm:$0xf0]  ;;  %v4300_v61 = vld [vmem:[#allocation7 + $0x124] sm:$0xf0] }
 0x123   : > { %v1730_v1 = vadd.f32 %v1729_v0, %v1711_v54  ;;  %v1785_v36 = vadd.f32 %v1784_v52, %v1766_v60  ;;  %v3900_v26 = vor.u32 %v4302_v3, %v3899_v2  ;;  %v3891_v60 = vld [vmem:[#allocation7 + $0x120] sm:$0xf]  ;;  %v4320_v2 = vld [vmem:[#allocation7 + $0x1c4] sm:$0xf0] }
 0x124   : > { %2533 = vmatpush.bf16.msrb.mxu1 %v3856_v48 }
 0x125   : > { %v1749_v7 = vadd.f32 %v1748_v23, %v1730_v1  ;;  %v2023_v30 = vmax.f32 %v1785_v36, 0.0 }
 0x126   : > { %2514 = vmatpush.bf16.msrb.mxu0 %v3792_v12  ;;  %v3824_v12 = vor.u32 %v4281_v9, %v3821_v58 }
 0x128   : > { %2534 = vmatpush.bf16.msrb.mxu1 %v3848_v33  ;;  %v1767_v42 = vpop.f32.mrf.mxu2  ;;  %v3923_v33 = vld [vmem:[#allocation7 + $0x160] sm:$0xf] }
 0x129   : > { %v1768_v53 = vadd.f32 %v1767_v42, %v1749_v7  ;;  %v1751_v44 = vpop.f32.mrf.mxu1  ;;  %v3924_v34 = vor.u32 %v4308_v4, %v3923_v33  ;;  %v3892_v7 = vor.u32 %v4300_v61, %v3891_v60 }
 0x12a   : > { %2515 = vmatpush.bf16.msrb.mxu0 %v3784_v17  ;;  %v1786_v19 = vpop.f32.mrf.mxu3  ;;  %v1732_v39 = vpop.f32.mrf.mxu0  ;;  %v4279_v17 = vld [vmem:[#allocation7 + $0x84] sm:$0xf] }
 0x12b   : > { %v1787_v48 = vadd.f32 %v1786_v19, %v1768_v53  ;;  %v3816_v27 = vor.u32 %v4279_v17, %v3813_v28  ;;  %v1733_v38 = vadd.f32 %v1732_v39, %v1714_v51  ;;  %2475 = vmatpush.bf16.msra.mxu2 %v3924_v34  ;;  %v3883_v19 = vld [vmem:[#allocation7 + $0x110] sm:$0xf]  ;;  %v3925_v17 = vld [vmem:[#allocation7 + $0x168] sm:$0xf0]  ;;  %v4326_v51 = vld [vmem:[#allocation7 + $0x1f4] sm:$0xf0] }
 0x12c   : > { %2535 = vmatpush.bf16.msrb.mxu1 %v3840_v63  ;;  %v4304_v63 = vld [vmem:[#allocation7 + $0x144] sm:$0xf0]  ;;  %v3884_v6 = vor.u32 %v4298_v55, %v3883_v19 }
 0x12d   : > { %2449 = vmatmul.bf16.gmra.mxu0 %v5037_v21  ;;  %v2027_v31 = vmax.f32 %v1787_v48, 0.0  ;;  %v1752_v47 = vadd.f32 %v1751_v44, %v1733_v38  ;;  %v3908_v54 = vor.u32 %v4304_v63, %v3907_v62  ;;  %v5060_v48 = vperm.slane %v4963_v37, 2  ;;  %v3917_v38 = vld [vmem:[#allocation7 + $0x158] sm:$0xf0] }
 0x12e   : > { %2516 = vmatpush.bf16.msrb.mxu0 %v3776_v40 }
 0x12f   : > { %v5043_v13 = vpack.c.bf16 %v2027_v31, %v2023_v30  ;;  %2476 = vmatpush.bf16.msra.mxu2 %v3916_v32 }
 0x130   : > { %2536 = vmatpush.bf16.msrb.mxu1 %v3832_v5  ;;  %v1770_v8 = vpop.f32.mrf.mxu2 }
 0x131   : > { %2463 = vmatmul.bf16.vlgmr.msra.gmra.mxu1 %v5043_v13  ;;  %v1753_v46 = vpop.f32.mrf.mxu1  ;;  %v1771_v41 = vadd.f32 %v1770_v8, %v1752_v47  ;;  %v3912_v47 = vor.u32 %v4303_v10, %v3909_v15 }
 0x132   : > { %2517 = vmatpush.bf16.msrb.mxu0 %v3768_v59  ;;  %v1789_v40 = vpop.f32.mrf.mxu3  ;;  %v1734_v56 = vpop.f32.mrf.mxu0 }
 0x133   : > { %v1735_v52 = vadd.f32 %v1734_v56, %v1716_v45  ;;  %2477 = vmatpush.bf16.msra.mxu2 %v3908_v54  ;;  %v1790_v14 = vadd.f32 %v1789_v40, %v1771_v41  ;;  %v3987_v40 = vld [vmem:[#allocation7 + $0x1e0] sm:$0xf]  ;;  %v4324_v45 = vld [vmem:[#allocation7 + $0x1e4] sm:$0xf0] }
 0x134   : > { %2537 = vmatpush.bf16.msrb.mxu1 %v3824_v12  ;;  %v4296_v12 = vld [vmem:[#allocation7 + $0x104] sm:$0xf0] }
 0x135   : > { %v1754_v0 = vadd.f32 %v1753_v46, %v1735_v52  ;;  %v2031_v57 = vmax.f32 %v1790_v14, 0.0  ;;  %v3988_v46 = vor.u32 %v4324_v45, %v3987_v40  ;;  %v4322_v52 = vld [vmem:[#allocation7 + $0x1d4] sm:$0xf0]  ;;  %v3901_v14 = vld [vmem:[#allocation7 + $0x138] sm:$0xf0] }
 0x136   : > { %2518 = vmatpush.bf16.msrb.mxu0 %v3760_v24 }
 0x137   : > { %2478 = vmatpush.bf16.msra.mxu2 %v3900_v26 }
 0x138   : > { %2538 = vmatpush.bf16.msrb.mxu1 %v3816_v27  ;;  %v1772_v23 = vpop.f32.mrf.mxu2  ;;  %v3995_v27 = vld [vmem:[#allocation7 + $0x1f0] sm:$0xf] }
 0x139   : > { %v1773_v16 = vadd.f32 %v1772_v23, %v1754_v0  ;;  %v1822_v59 = vpop.f32.mrf.mxu1  ;;  %v3996_v33 = vor.u32 %v4326_v51, %v3995_v27  ;;  %v3877_v27 = vld [vmem:[#allocation7 + $0x108] sm:$0xf0] }
 0x13a   : > { %2519 = vmatpush.bf16.msrb.mxu0 %v3752_v22  ;;  %v1791_v18 = vpop.f32.mrf.mxu3  ;;  %v1803_v1 = vpop.f32.mrf.mxu0  ;;  %v4307_v22 = vld [vmem:[#allocation7 + $0x164] sm:$0xf] }
 0x13b   : > { %v1792_v35 = vadd.f32 %v1791_v18, %v1773_v16  ;;  %2479 = vmatpush.bf16.msra.mxu2 %v3892_v7  ;;  %v3928_v28 = vor.u32 %v4307_v22, %v3925_v17  ;;  %v1804_v29 = vadd.f32 %v1803_v1, %v5060_v48  ;;  %2493 = vmatpush.bf16.msra.mxu3 %v3996_v33  ;;  %v4301_v18 = vld [vmem:[#allocation7 + $0x134] sm:$0xf]  ;;  %v3963_v7 = vld [vmem:[#allocation7 + $0x1b0] sm:$0xf] }
 0x13c   : > { %v3904_v1 = vor.u32 %v4301_v18, %v3901_v14 }
 0x13d   : > { %2520 = vmatmul.bf16.vlgmr.msrb.gmra.mxu0 %v5023_v25  ;;  %v2035_v5 = vmax.f32 %v1792_v35, 0.0  ;;  %v3875_v25 = vld [vmem:[#allocation7 + $0x100] sm:$0xf]  ;;  %v1823_v56 = vadd.f32 %v1822_v59, %v1804_v29 }
 0x13e   : > { %v3876_v43 = vor.u32 %v4296_v12, %v3875_v25  ;;  %v3971_v59 = vld [vmem:[#allocation7 + $0x1c0] sm:$0xf]  ;;  %v4297_v12 = vld [vmem:[#allocation7 + $0x114] sm:$0xf] }
 0x13f   : > { %v5048_v24 = vpack.c.bf16 %v2035_v5, %v2031_v57  ;;  %2480 = vmatpush.bf16.msra.mxu2 %v3884_v6  ;;  %2494 = vmatpush.bf16.msra.mxu3 %v3988_v46  ;;  %v3972_v35 = vor.u32 %v4320_v2, %v3971_v59  ;;  %v4299_v57 = vld [vmem:[#allocation7 + $0x124] sm:$0xf]  ;;  %v3893_v5 = vld [vmem:[#allocation7 + $0x128] sm:$0xf0] }
 0x140   : > { %v1841_v9 = vpop.f32.mrf.mxu2  ;;  %v3896_v61 = vor.u32 %v4299_v57, %v3893_v5  ;;  %v4323_v59 = vld [vmem:[#allocation7 + $0x1e4] sm:$0xf]  ;;  %v4321_v57 = vld [vmem:[#allocation7 + $0x1d4] sm:$0xf] }
 0x141   : > { %2468 = vmatmul.bf16.gmra.mxu1 %v5048_v24  ;;  %v1824_v42 = vpop.f32.mrf.mxu1  ;;  %v1842_v41 = vadd.f32 %v1841_v9, %v1823_v56  ;;  %v4318_v9 = vld [vmem:[#allocation7 + $0x1b4] sm:$0xf0] }
 0x142   : > { %v5050_v58 = vpop.f32.mrf.mxu3  ;;  %v1805_v11 = vpop.f32.mrf.mxu0 }
 0x143   : > { %2481 = vmatpush.bf16.msra.mxu2 %v3876_v43  ;;  %v1806_v32 = vadd.f32 %v1805_v11, %v5060_v48  ;;  %v1861_v3 = vadd.f32 %v5050_v58, %v1842_v41  ;;  %v3964_v58 = vor.u32 %v4318_v9, %v3963_v7  ;;  %v3885_v43 = vld [vmem:[#allocation7 + $0x118] sm:$0xf0] }
 0x144   : > { %v3888_v49 = vor.u32 %v4297_v12, %v3885_v43  ;;  %v3997_v41 = vld [vmem:[#allocation7 + $0x1f8] sm:$0xf0] }
 0x145   : > { %v1825_v16 = vadd.f32 %v1824_v42, %v1806_v32 }
 0x147   : > { %2550 = vmatpush.bf16.msrb.mxu2 %v3936_v50  ;;  %v4316_v50 = vld [vmem:[#allocation7 + $0x1a4] sm:$0xf0] }
 0x148   : > { %v1843_v36 = vpop.f32.mrf.mxu2 }
 0x149   : > { %v5057_v44 = vpop.f32.mrf.mxu1  ;;  %v1844_v26 = vadd.f32 %v1843_v36, %v1825_v16 }
 0x14a   : > { %v5053_v53 = vpop.f32.mrf.mxu3  ;;  %v5055_v39 = vpop.f32.mrf.mxu0 }
 0x14b   : > { %2551 = vmatpush.bf16.msrb.mxu2 %v3928_v28  ;;  %v1863_v11 = vadd.f32 %v5053_v53, %v1844_v26  ;;  %v1809_v42 = vadd.f32 %v5055_v39, %v5060_v48  ;;  %v3955_v53 = vld [vmem:[#allocation7 + $0x1a0] sm:$0xf]  ;;  %v4295_v28 = vld [vmem:[#allocation7 + $0x104] sm:$0xf] }
 0x14c   : > { %v3956_v17 = vor.u32 %v4316_v50, %v3955_v53  ;;  %v3880_v33 = vor.u32 %v4295_v28, %v3877_v27  ;;  %v3957_v28 = vld [vmem:[#allocation7 + $0x1a8] sm:$0xf0] }
 0x14d   : > { %2525 = vmatmul.bf16.gmra.mxu0 %v5037_v21  ;;  %v4305_v21 = vld [vmem:[#allocation7 + $0x154] sm:$0xf]  ;;  %v1828_v39 = vadd.f32 %v5057_v44, %v1809_v42 }
 0x14e   : > { %v3920_v8 = vor.u32 %v4305_v21, %v3917_v38  ;;  %v3947_v21 = vld [vmem:[#allocation7 + $0x190] sm:$0xf]  ;;  %v4314_v38 = vld [vmem:[#allocation7 + $0x194] sm:$0xf0] }
 0x14f   : > { %v3948_v56 = vor.u32 %v4314_v38, %v3947_v21 }
 0x150   : > { %v5064_v30 = vpop.f32.mrf.mxu2  ;;  %2552 = vmatpush.bf16.msrb.mxu2 %v3920_v8 }
 0x151   : > { %2539 = vmatmul.bf16.vlgmr.msrb.gmra.mxu1 %v5043_v13  ;;  %v5071_v34 = vpop.f32.mrf.mxu1  ;;  %v3979_v13 = vld [vmem:[#allocation7 + $0x1d0] sm:$0xf]  ;;  %v1847_v8 = vadd.f32 %v5064_v30, %v1828_v39 }
 0x152   : > { %v5066_v31 = vpop.f32.mrf.mxu3  ;;  %v5069_v4 = vpop.f32.mrf.mxu0  ;;  %v3980_v54 = vor.u32 %v4322_v52, %v3979_v13  ;;  %v4325_v52 = vld [vmem:[#allocation7 + $0x1f4] sm:$0xf] }
 0x153   : > { %v1866_v32 = vadd.f32 %v5066_v31, %v1847_v8  ;;  %v3989_v31 = vld [vmem:[#allocation7 + $0x1e8] sm:$0xf0] }
 0x154   : > { %2553 = vmatpush.bf16.msrb.mxu2 %v3912_v47  ;;  %2495 = vmatpush.bf16.msra.mxu3 %v3980_v54 }
 0x158   : > { %v5074_v62 = vpop.f32.mrf.mxu2  ;;  %2554 = vmatpush.bf16.msrb.mxu2 %v3904_v1  ;;  %2496 = vmatpush.bf16.msra.mxu3 %v3972_v35 }
 0x159   : > { %v1898_v23 = vpop.f32.mrf.mxu1 }
 0x15a   : > { %v5076_v63 = vpop.f32.mrf.mxu3  ;;  %v1879_v0 = vpop.f32.mrf.mxu0 }
 0x15b   : > { %v1880_v60 = vadd.f32 %v1879_v0, %v1861_v3  ;;  %v601_v3 = vperm.slane %v4963_v37, 3 }
 0x15c   : > { %2555 = vmatpush.bf16.msrb.mxu2 %v3896_v61  ;;  %2497 = vmatpush.bf16.msra.mxu3 %v3964_v58  ;;  %v4319_v58 = vld [vmem:[#allocation7 + $0x1c4] sm:$0xf] }
 0x15d   : > { %v1899_v36 = vadd.f32 %v1898_v23, %v1880_v60 }
 0x15f   : > { %v2024_v51 = vmax.f32 %v1899_v36, 0.0  ;;  %v4317_v36 = vld [vmem:[#allocation7 + $0x1b4] sm:$0xf] }
 0x160   : > { %v5082_v19 = vpop.f32.mrf.mxu2  ;;  %2556 = vmatpush.bf16.msrb.mxu2 %v3888_v49  ;;  %2498 = vmatpush.bf16.msra.mxu3 %v3956_v17  ;;  %v4315_v17 = vld [vmem:[#allocation7 + $0x1a4] sm:$0xf] }
 0x161   : > { %2544 = vmatmul.bf16.gmra.mxu1 %v5048_v24  ;;  %v1900_v25 = vpop.f32.mrf.mxu1  ;;  %v1811_v24 = vadd.f32 %v5069_v4, %v5060_v48  ;;  %v3939_v48 = vld [vmem:[#allocation7 + $0x180] sm:$0xf]  ;;  %v4312_v4 = vld [vmem:[#allocation7 + $0x184] sm:$0xf0]  ;;  %v1918_v9 = vadd.f32 %v5082_v19, %v601_v3 }
 0x162   : > { %v5084_v55 = vpop.f32.mrf.mxu3  ;;  %v1881_v6 = vpop.f32.mrf.mxu0  ;;  %v3940_v30 = vor.u32 %v4312_v4, %v3939_v48  ;;  %v3941_v48 = vld [vmem:[#allocation7 + $0x188] sm:$0xf0] }
 0x163   : > { %v1882_v20 = vadd.f32 %v1881_v6, %v1863_v11  ;;  %v1830_v15 = vadd.f32 %v5071_v34, %v1811_v24  ;;  %v4000_v34 = vor.u32 %v4325_v52, %v3997_v41  ;;  %v3973_v6 = vld [vmem:[#allocation7 + $0x1c8] sm:$0xf0] }
 0x164   : > { %2557 = vmatpush.bf16.msrb.mxu2 %v3880_v33  ;;  %2499 = vmatpush.bf16.msra.mxu3 %v3948_v56  ;;  %v3976_v37 = vor.u32 %v4319_v58, %v3973_v6  ;;  %v3949_v33 = vld [vmem:[#allocation7 + $0x198] sm:$0xf0]  ;;  %v4328_v58 = vld [vmem:[#allocation9 + $0x8] sm:$0xff] }
 0x165   : > { %v1901_v22 = vadd.f32 %v1900_v25, %v1882_v20  ;;  %v1849_v47 = vadd.f32 %v5074_v62, %v1830_v15  ;;  %v3992_v62 = vor.u32 %v4323_v59, %v3989_v31  ;;  %v1937_v25 = vadd.f32 %v5084_v55, %v1918_v9  ;;  %v3965_v20 = vld [vmem:[#allocation7 + $0x1b8] sm:$0xf0]  ;;  %v4311_v15 = vld [vmem:[#allocation7 + $0x184] sm:$0xf]  ;;  %v4332_v9 = vld [vmem:[#allocation9 + $0x28] sm:$0xff] }
 0x166   : > { %v3968_v50 = vor.u32 %v4317_v36, %v3965_v20  ;;  %v4341_v36 = vld [vmem:[#allocation9 + $0x70] sm:$0xff] }
 0x167   : > { %v2028_v29 = vmax.f32 %v1901_v22, 0.0  ;;  %v1868_v54 = vadd.f32 %v5076_v63, %v1849_v47  ;;  %v3981_v63 = vld [vmem:[#allocation7 + $0x1d8] sm:$0xf0] }
 0x168   : > { %v1919_v45 = vpop.f32.mrf.mxu2  ;;  %2500 = vmatpush.bf16.msra.mxu3 %v3940_v30  ;;  %v3984_v7 = vor.u32 %v4321_v57, %v3981_v63 }
 0x169   : > { %v5091_v40 = vpack.c.bf16 %v2028_v29, %v2024_v51  ;;  %v1903_v10 = vpop.f32.mrf.mxu1  ;;  %v1920_v12 = vadd.f32 %v1919_v45, %v601_v3  ;;  %v3960_v51 = vor.u32 %v4315_v17, %v3957_v28  ;;  %v4313_v29 = vld [vmem:[#allocation7 + $0x194] sm:$0xf]  ;;  %v4338_v28 = vld [vmem:[#allocation9 + $0x58] sm:$0xff] }
 0x16a   : > { %v1938_v44 = vpop.f32.mrf.mxu3  ;;  %v1884_v46 = vpop.f32.mrf.mxu0  ;;  %v3952_v21 = vor.u32 %v4313_v29, %v3949_v33  ;;  %v4337_v33 = vld [vmem:[#allocation9 + $0x50] sm:$0xff] }
 0x16b   : > { %2482 = vmatmul.bf16.vlgmr.msra.gmra.mxu2 %v5091_v40  ;;  %v1885_v13 = vadd.f32 %v1884_v46, %v1866_v32  ;;  %v1939_v39 = vadd.f32 %v1938_v44, %v1920_v12  ;;  %v3944_v32 = vor.u32 %v4311_v15, %v3941_v48 }
 0x16c   : > { %2569 = vmatpush.bf16.msrb.mxu3 %v4000_v34 }
 0x16d   : > { %v1904_v16 = vadd.f32 %v1903_v10, %v1885_v13 }
 0x16f   : > { %v2032_v26 = vmax.f32 %v1904_v16, 0.0 }
 0x170   : > { %v1922_v0 = vpop.f32.mrf.mxu2  ;;  %2570 = vmatpush.bf16.msrb.mxu3 %v3992_v62 }
 0x171   : > { %v1905_v14 = vpop.f32.mrf.mxu1  ;;  %v1923_v56 = vadd.f32 %v1922_v0, %v601_v3 }
 0x172   : > { %v5098_v23 = vpop.f32.mrf.mxu3  ;;  %v1886_v18 = vpop.f32.mrf.mxu0 }
 0x173   : > { %v1887_v1 = vadd.f32 %v1886_v18, %v1868_v54  ;;  %v1942_v30 = vadd.f32 %v5098_v23, %v1923_v56 }
 0x174   : > { %2571 = vmatpush.bf16.msrb.mxu3 %v3984_v7  ;;  %v4333_v7 = vld [vmem:[#allocation9 + $0x30] sm:$0xff] }
 0x175   : > { %v1906_v2 = vadd.f32 %v1905_v14, %v1887_v1 }
 0x177   : > { %v2036_v35 = vmax.f32 %v1906_v2, 0.0 }
 0x178   : > { %v1924_v60 = vpop.f32.mrf.mxu2  ;;  %2572 = vmatpush.bf16.msrb.mxu3 %v3976_v37  ;;  %v4327_v37 = vld [vmem:[#allocation9] sm:$0xff] }
 0x179   : > { %v5101_v5 = vpack.c.bf16 %v2036_v35, %v2032_v26  ;;  %v1974_v42 = vpop.f32.mrf.mxu1  ;;  %v1925_v13 = vadd.f32 %v1924_v60, %v601_v3 }
 0x17a   : > { %v1943_v61 = vpop.f32.mrf.mxu3  ;;  %v1955_v11 = vpop.f32.mrf.mxu0 }
 0x17b   : > { %2487 = vmatmul.bf16.gmra.mxu2 %v5101_v5  ;;  %v1956_v43 = vadd.f32 %v1955_v11, %v1937_v25  ;;  %v1944_v14 = vadd.f32 %v1943_v61, %v1925_v13  ;;  %v4334_v61 = vld [vmem:[#allocation9 + $0x38] sm:$0xff]  ;;  %v4331_v11 = vld [vmem:[#allocation9 + $0x20] sm:$0xff] }
 0x17c   : > { %2573 = vmatpush.bf16.msrb.mxu3 %v3968_v50  ;;  %2732 = vmatpush.bf16.msra.mxu0 %v4334_v61 }
 0x17d   : > { %v1975_v27 = vadd.f32 %v1974_v42, %v1956_v43  ;;  %4354 = vmatpush.bf16.msra.mxu2 %v4334_v61  ;;  %v4329_v42 = vld [vmem:[#allocation9 + $0x10] sm:$0xff]  ;;  %v4342_v43 = vld [vmem:[#allocation9 + $0x78] sm:$0xff] }
 0x17e   : > { %2751 = vmatpush.bf16.msra.mxu1 %v4342_v43 }
 0x180   : > { %v1993_v49 = vpop.f32.mrf.mxu2  ;;  %2574 = vmatpush.bf16.msrb.mxu3 %v3960_v51  ;;  %2733 = vmatpush.bf16.msra.mxu0 %v4333_v7 }
 0x181   : > { %v1976_v22 = vpop.f32.mrf.mxu1  ;;  %v1994_v55 = vadd.f32 %v1993_v49, %v1975_v27  ;;  %4355 = vmatpush.bf16.msra.mxu2 %v4333_v7 }
 0x182   : > { %v2012_v53 = vpop.f32.mrf.mxu3  ;;  %v1957_v19 = vpop.f32.mrf.mxu0  ;;  %2752 = vmatpush.bf16.msra.mxu1 %v4341_v36 }
 0x183   : > { %v1958_v24 = vadd.f32 %v1957_v19, %v1939_v39  ;;  %v2013_v46 = vadd.f32 %v2012_v53, %v1994_v55  ;;  %v4340_v53 = vld [vmem:[#allocation9 + $0x68] sm:$0xff]  ;;  %v2110_v39 = vld [vmem:[%s5141_s4] sm:$0x3]  ;;  %v4339_v19 = vld [vmem:[#allocation9 + $0x60] sm:$0xff] }
 0x184   : > { %2575 = vmatpush.bf16.msrb.mxu3 %v3952_v21  ;;  %2734 = vmatpush.bf16.msra.mxu0 %v4332_v9 }
 0x185   : > { %v1977_v38 = vadd.f32 %v1976_v22, %v1958_v24  ;;  %v2025_v52 = vmax.f32 %v2013_v46, 0.0  ;;  %4356 = vmatpush.bf16.msra.mxu2 %v4332_v9  ;;  %v2112_v22 = vperm.slane %v2110_v39, 0 }
 0x186   : > { %2753 = vmatpush.bf16.msra.mxu1 %v4340_v53 }
 0x188   : > { %v1995_v8 = vpop.f32.mrf.mxu2  ;;  %2576 = vmatpush.bf16.msrb.mxu3 %v3944_v32  ;;  %2735 = vmatpush.bf16.msra.mxu0 %v4331_v11 }
 0x189   : > { %v1996_v10 = vadd.f32 %v1995_v8, %v1977_v38  ;;  %v1979_v47 = vpop.f32.mrf.mxu1  ;;  %4357 = vmatpush.bf16.msra.mxu2 %v4331_v11 }
 0x18a   : > { %v2014_v45 = vpop.f32.mrf.mxu3  ;;  %v1960_v44 = vpop.f32.mrf.mxu0  ;;  %2754 = vmatpush.bf16.msra.mxu1 %v4339_v19 }
 0x18b   : > { %2558 = vmatmul.bf16.vlgmr.msrb.gmra.mxu2 %v5091_v40  ;;  %v2015_v4 = vadd.f32 %v2014_v45, %v1996_v10  ;;  %v1961_v34 = vadd.f32 %v1960_v44, %v1942_v30  ;;  %v4336_v45 = vld [vmem:[#allocation9 + $0x48] sm:$0xff] }
 0x18d   : > { %v2029_v41 = vmax.f32 %v2015_v4, 0.0  ;;  %v1980_v40 = vadd.f32 %v1979_v47, %v1961_v34  ;;  %v4335_v4 = vld [vmem:[#allocation9 + $0x40] sm:$0xff] }
 0x18e   : > { %2755 = vmatpush.bf16.msra.mxu1 %v4338_v28 }
 0x18f   : > { %v2041_v54 = vpack.c.bf16 %v2029_v41, %v2025_v52 }
 0x190   : > { %v1998_v0 = vpop.f32.mrf.mxu2 }
 0x191   : > { %2501 = vmatmul.bf16.vlgmr.msra.gmra.mxu3 %v2041_v54  ;;  %v1999_v59 = vadd.f32 %v1998_v0, %v1980_v40  ;;  %v1981_v31 = vpop.f32.mrf.mxu1 }
 0x192   : > { %v2017_v18 = vpop.f32.mrf.mxu3  ;;  %v1962_v16 = vpop.f32.mrf.mxu0  ;;  %4362 = vmatpush.bf16.msra.mxu3 %v4342_v43  ;;  %2756 = vmatpush.bf16.msra.mxu1 %v4337_v33 }
 0x193   : > { %v1963_v1 = vadd.f32 %v1962_v16, %v1944_v14  ;;  %v2018_v26 = vadd.f32 %v2017_v18, %v1999_v59 }
 0x195   : > { %v1982_v2 = vadd.f32 %v1981_v31, %v1963_v1  ;;  %v2033_v57 = vmax.f32 %v2018_v26, 0.0 }
 0x196   : > { %4363 = vmatpush.bf16.msra.mxu3 %v4341_v36  ;;  %2757 = vmatpush.bf16.msra.mxu1 %v4336_v45 }
 0x198   : > { %v2000_v62 = vpop.f32.mrf.mxu2 }
 0x199   : > { %v2001_v35 = vadd.f32 %v2000_v62, %v1982_v2 }
 0x19a   : > { %v2019_v23 = vpop.f32.mrf.mxu3  ;;  %v2445_v6 = vpop.f32.mrf.mxu0  ;;  %4364 = vmatpush.bf16.msra.mxu3 %v4340_v53  ;;  %2758 = vmatpush.bf16.msra.mxu1 %v4335_v4 }
 0x19b   : > { %2563 = vmatmul.bf16.gmra.mxu2 %v5101_v5  ;;  %v2020_v3 = vadd.f32 %v2019_v23, %v2001_v35  ;;  %v4330_v5 = vld [vmem:[#allocation9 + $0x18] sm:$0xff]  ;;  %v2446_v51 = vadd.f32 %v2445_v6, %v2112_v22  ;;  %v2113_v23 = vperm.slane %v2110_v39, 1 }
 0x19c   : > { %2736 = vmatpush.bf16.msra.mxu0 %v4330_v5  ;;  %4358 = vmatpush.bf16.msra.mxu2 %v4330_v5 }
 0x19d   : > { %v2037_v63 = vmax.f32 %v2020_v3, 0.0 }
 0x19e   : > { %4365 = vmatpush.bf16.msra.mxu3 %v4339_v19 }
 0x19f   : > { %v2045_v60 = vpack.c.bf16 %v2037_v63, %v2033_v57 }
 0x1a0   : > { %2737 = vmatpush.bf16.msra.mxu0 %v4329_v42  ;;  %4359 = vmatpush.bf16.msra.mxu2 %v4329_v42 }
 0x1a1   : > { %2506 = vmatmul.bf16.gmra.mxu3 %v2045_v60 }
 0x1a2   : > { %v2447_v20 = vpop.f32.mrf.mxu0  ;;  %4366 = vmatpush.bf16.msra.mxu3 %v4338_v28 }
 0x1a3   : > { %v2448_v55 = vadd.f32 %v2447_v20, %v2112_v22 }
 0x1a4   : > { %2738 = vmatpush.bf16.msra.mxu0 %v4328_v58  ;;  %4360 = vmatpush.bf16.msra.mxu2 %v4328_v58 }
 0x1a6   : > { %4367 = vmatpush.bf16.msra.mxu3 %v4337_v33 }
 0x1a8   : > { %2739 = vmatpush.bf16.msra.mxu0 %v4327_v37  ;;  %4361 = vmatpush.bf16.msra.mxu2 %v4327_v37 }
 0x1aa   : > { %v2450_v17 = vpop.f32.mrf.mxu0  ;;  %4368 = vmatpush.bf16.msra.mxu3 %v4336_v45 }
 0x1ab   : > { %v2451_v41 = vadd.f32 %v2450_v17, %v2112_v22 }
 0x1ae   : > { %v2464_v25 = vpop.f32.mrf.mxu1  ;;  %4369 = vmatpush.bf16.msra.mxu3 %v4335_v4 }
 0x1af   : > { %v2465_v21 = vadd.f32 %v2464_v25, %v2446_v51 }
 0x1b1   : > { %2577 = vmatmul.bf16.vlgmr.msrb.gmra.mxu3 %v2041_v54 }
 0x1b2   : > { %v2452_v10 = vpop.f32.mrf.mxu0 }
 0x1b3   : > { %v2453_v34 = vadd.f32 %v2452_v10, %v2112_v22 }
 0x1b6   : > { %v2466_v49 = vpop.f32.mrf.mxu1 }
 0x1b7   : > { %v2467_v38 = vadd.f32 %v2466_v49, %v2448_v55 }
 0x1ba   : > { %v2521_v54 = vpop.f32.mrf.mxu0 }
 0x1bb   : > { %v2522_v61 = vadd.f32 %v2521_v54, %v2113_v23 }
 0x1be   : > { %v2469_v27 = vpop.f32.mrf.mxu1 }
 0x1bf   : > { %v2470_v0 = vadd.f32 %v2469_v27, %v2451_v41 }
 0x1c1   : > { %2582 = vmatmul.bf16.gmra.mxu3 %v2045_v60 }
 0x1c2   : > { %v2523_v35 = vpop.f32.mrf.mxu0 }
 0x1c3   : > { %v2524_v7 = vadd.f32 %v2523_v35, %v2113_v23 }
 0x1c6   : > { %v2471_v48 = vpop.f32.mrf.mxu1 }
 0x1c7   : > { %v2472_v14 = vadd.f32 %v2471_v48, %v2453_v34 }
 0x1ca   : > { %v2526_v42 = vpop.f32.mrf.mxu0 }
 0x1cb   : > { %v2527_v39 = vadd.f32 %v2526_v42, %v2113_v23 }
 0x1ce   : > { %v2540_v18 = vpop.f32.mrf.mxu1 }
 0x1cf   : > { %v2541_v9 = vadd.f32 %v2540_v18, %v2522_v61 }
 0x1d2   : > { %v2528_v53 = vpop.f32.mrf.mxu0 }
 0x1d3   : > { %v2529_v22 = vadd.f32 %v2528_v53, %v2113_v23 }
 0x1d6   : > { %v2542_v57 = vpop.f32.mrf.mxu1 }
 0x1d7   : > { %v2543_v11 = vadd.f32 %v2542_v57, %v2524_v7 }
 0x1de   : > { %v2545_v37 = vpop.f32.mrf.mxu1 }
 0x1df   : > { %v2546_v17 = vadd.f32 %v2545_v37, %v2527_v39 }
 0x1e6   : > { %v2547_v19 = vpop.f32.mrf.mxu1 }
 0x1e7   : > { %v2548_v27 = vadd.f32 %v2547_v19, %v2529_v22 }
 0x1ee   : > { %v2483_v12 = vpop.f32.mrf.mxu2 }
 0x1ef   : > { %v2484_v8 = vadd.f32 %v2483_v12, %v2465_v21 }
 0x1f6   : > { %v2485_v50 = vpop.f32.mrf.mxu2 }
 0x1f7   : > { %v2486_v56 = vadd.f32 %v2485_v50, %v2467_v38 }
 0x1fe   : > { %v2488_v29 = vpop.f32.mrf.mxu2 }
 0x1ff   : > { %v2489_v16 = vadd.f32 %v2488_v29, %v2470_v0 }
 0x206   : > { %v2490_v30 = vpop.f32.mrf.mxu2 }
 0x207   : > { %v2491_v1 = vadd.f32 %v2490_v30, %v2472_v14 }
 0x20e   : > { %v2559_v40 = vpop.f32.mrf.mxu2 }
 0x20f   : > { %v2560_v5 = vadd.f32 %v2559_v40, %v2541_v9 }
 0x214   : > { %v2502_v24 = vpop.f32.mrf.mxu3 }
 0x215   : > { %v2503_v46 = vadd.f32 %v2502_v24, %v2484_v8 }
 0x216   : > { %v2561_v63 = vpop.f32.mrf.mxu2 }
 0x217   : > { %v2588_v32 = vmax.f32 %v2503_v46, 0.0  ;;  %v2562_v58 = vadd.f32 %v2561_v63, %v2543_v11 }
 0x21c   : > { %v2504_v44 = vpop.f32.mrf.mxu3 }
 0x21d   : > { %v2505_v15 = vadd.f32 %v2504_v44, %v2486_v56  ;;  %v4461_v56 = vld [vmem:[%s5143_s6] ss:$0 sm:$0xff] }
 0x21e   : > { %v2564_v43 = vpop.f32.mrf.mxu2 }
 0x21f   : > { %v2590_v47 = vmax.f32 %v2505_v15, 0.0  ;;  %v2565_v24 = vadd.f32 %v2564_v43, %v2546_v17 }
 0x221   : > { %v2596_v13 = vpack.c.bf16 %v2590_v47, %v2588_v32 }
 0x223   : > { %2740 = vmatmul.bf16.vlgmr.msra.gmra.mxu0 %v2596_v13 }
 0x224   : > { %v2507_v52 = vpop.f32.mrf.mxu3 }
 0x225   : > { %v2508_v59 = vadd.f32 %v2507_v52, %v2489_v16 }
 0x226   : > { %v2566_v28 = vpop.f32.mrf.mxu2 }
 0x227   : > { %v2592_v62 = vmax.f32 %v2508_v59, 0.0  ;;  %v2567_v51 = vadd.f32 %v2566_v28, %v2548_v27 }
 0x22c   : > { %v2509_v31 = vpop.f32.mrf.mxu3 }
 0x22d   : > { %v2510_v2 = vadd.f32 %v2509_v31, %v2491_v1 }
 0x22f   : > { %v2594_v26 = vmax.f32 %v2510_v2, 0.0 }
 0x231   : > { %v2598_v3 = vpack.c.bf16 %v2594_v26, %v2592_v62 }
 0x233   : > { %2745 = vmatmul.bf16.vlgmr.msra.gmra.mxu2 %v2598_v3 }
 0x234   : > { %v2578_v60 = vpop.f32.mrf.mxu3 }
 0x235   : > { %v2579_v6 = vadd.f32 %v2578_v60, %v2560_v5 }
 0x237   : > { %v2589_v36 = vmax.f32 %v2579_v6, 0.0 }
 0x23c   : > { %v2580_v25 = vpop.f32.mrf.mxu3 }
 0x23d   : > { %v2581_v12 = vadd.f32 %v2580_v25, %v2562_v58 }
 0x23f   : > { %v2591_v20 = vmax.f32 %v2581_v12, 0.0 }
 0x241   : > { %v2597_v49 = vpack.c.bf16 %v2591_v20, %v2589_v36 }
 0x243   : > { %2759 = vmatmul.bf16.vlgmr.msra.gmra.mxu1 %v2597_v49 }
 0x244   : > { %v2583_v50 = vpop.f32.mrf.mxu3 }
 0x245   : > { %v2584_v29 = vadd.f32 %v2583_v50, %v2565_v24 }
 0x247   : > { %v2593_v21 = vmax.f32 %v2584_v29, 0.0 }
 0x24c   : > { %v2585_v33 = vpop.f32.mrf.mxu3 }
 0x24d   : > { %v2586_v55 = vadd.f32 %v2585_v33, %v2567_v51 }
 0x24f   : > { %v2595_v38 = vmax.f32 %v2586_v55, 0.0 }
 0x251   : > { %v2599_v8 = vpack.c.bf16 %v2595_v38, %v2593_v21 }
 0x253   : > { %2764 = vmatmul.bf16.vlgmr.msra.gmra.mxu3 %v2599_v8 }
 0x2a0   : > { %v2741_v45 = vpop.f32.mrf.mxu0 }
 0x2a1   : > { %v2742_v46 = vadd.f32 %v4461_v56, %v2741_v45 }
 0x2a8   : > { %v2743_v48 = vpop.f32.mrf.mxu0 }
 0x2a9   : > { %v2744_v4 = vadd.f32 %v4461_v56, %v2743_v48 }
 0x2b6   : > { %v2746_v41 = vpop.f32.mrf.mxu2 }
 0x2b7   : > { %v2747_v18 = vadd.f32 %v4461_v56, %v2746_v41 }
 0x2be   : > { %v2748_v31 = vpop.f32.mrf.mxu2 }
 0x2bf   : > { %v2749_v26 = vadd.f32 %v4461_v56, %v2748_v31 }
 0x2c0   : > { %v2760_v10 = vpop.f32.mrf.mxu1 }
 0x2c1   : > { %v2761_v44 = vadd.f32 %v2760_v10, %v2742_v46 }
 0x2c3   : > { %v4065_v15 = vmul.f32 -1.442695, %v2761_v44 }
 0x2c5   : > { %4462 = vpow2.f32 %v4065_v15 }
 0x2c8   : > { %v2762_v32 = vpop.f32.mrf.mxu1 }
 0x2c9   : > { %v2763_v47 = vadd.f32 %v2762_v32, %v2744_v4 }
 0x2cb   : > { %v4463_v30 = vpop.eup %4462  ;;  %v4066_v13 = vmul.f32 -1.442695, %v2763_v47 }
 0x2cc   : > { %v2782_v52 = vadd.f32 1.0, %v4463_v30 }
 0x2cd   : > { %4464 = vpow2.f32 %v4066_v13 }
 0x2ce   : > { %4466 = vrcp.f32 %v2782_v52  ;;  %vm2791_vm1 = vweird.f32 %v2782_v52  ;;  %v2795_v60 = vand.u32 2147483647, %v2782_v52  ;;  %v2797_v61 = vand.u32 2147483648, %v2782_v52 }
 0x2d0   : > { %v2798_v25 = vor.u32 1.1754944e-38, %v2797_v61  ;;  %vm2796_vm6 = vcmp.eq.f32.partialorder %v2795_v60, 8.507059e+37 }
 0x2d3   : > { %v4465_v54 = vpop.eup %4464 }
 0x2d4   : > { %v4467_v34 = vpop.eup %4466  ;;  %v2783_v0 = vadd.f32 1.0, %v4465_v54 }
 0x2d5   : > { %v2787_v14 = vmul.f32 %v4467_v34, %v2782_v52  ;;  %vm2792_vm0 = vweird.f32 %v4467_v34 }
 0x2d6   : > { %4468 = vrcp.f32 %v2783_v0  ;;  %v2765_v16 = vpop.f32.mrf.mxu3  ;;  %v2812_v7 = vand.u32 2147483648, %v2783_v0  ;;  %v2810_v5 = vand.u32 2147483647, %v2783_v0  ;;  %vm2793_vm3 = vmor %vm2791_vm1, %vm2792_vm0  ;;  %vm2806_vm4 = vweird.f32 %v2783_v0 }
 0x2d7   : > { %v2788_v40 = vsub.f32 1.0, %v2787_v14  ;;  %v2766_v1 = vadd.f32 %v2765_v16, %v2747_v18 }
 0x2d8   : > { %v2813_v12 = vor.u32 1.1754944e-38, %v2812_v7  ;;  %vm2811_vm7 = vcmp.eq.f32.partialorder %v2810_v5, 8.507059e+37 }
 0x2d9   : > { %v4067_v59 = vmul.f32 -1.442695, %v2766_v1  ;;  %v2789_v2 = vmul.f32 %v4467_v34, %v2788_v40 }
 0x2db   : > { %4470 = vpow2.f32 %v4067_v59  ;;  %v2790_v3 = vadd.f32 %v4467_v34, %v2789_v2 }
 0x2dc   : > { %v4469_v62 = vpop.eup %4468 }
 0x2dd   : > { %v2802_v35 = vmul.f32 %v4469_v62, %v2783_v0  ;;  %vm2807_vm2 = vweird.f32 %v4469_v62  ;;  %v2794_v6 = vsel %vm2793_vm3, %v4467_v34, %v2790_v3 }
 0x2de   : > { %v2767_v23 = vpop.f32.mrf.mxu3  ;;  %vm2808_vm5 = vmor %vm2806_vm4, %vm2807_vm2  ;;  %v2799_v36 = vsel %vm2796_vm6, %v2798_v25, %v2794_v6 }
 0x2df   : > { %v2803_v57 = vsub.f32 1.0, %v2802_v35  ;;  %v2768_v63 = vadd.f32 %v2767_v23, %v2749_v26 }
 0x2e1   : > { %v4471_v9 = vpop.eup %4470  ;;  %v2804_v11 = vmul.f32 %v4469_v62, %v2803_v57  ;;  %v4068_v42 = vmul.f32 -1.442695, %v2768_v63 }
 0x2e2   : > { %v2784_v58 = vadd.f32 1.0, %v4471_v9 }
 0x2e3   : > { %v2805_v37 = vadd.f32 %v4469_v62, %v2804_v11  ;;  %4472 = vpow2.f32 %v4068_v42 }
 0x2e4   : > { %4474 = vrcp.f32 %v2784_v58  ;;  %vm2821_vm9 = vweird.f32 %v2784_v58  ;;  %v2827_v29 = vand.u32 2147483648, %v2784_v58  ;;  %v2825_v55 = vand.u32 2147483647, %v2784_v58 }
 0x2e5   : > { %v2809_v43 = vsel %vm2808_vm5, %v4469_v62, %v2805_v37 }
 0x2e6   : > { %v2814_v20 = vsel %vm2811_vm7, %v2813_v12, %v2809_v43  ;;  %v2828_v56 = vor.u32 1.1754944e-38, %v2827_v29  ;;  %vm2826_vm14 = vcmp.eq.f32.partialorder %v2825_v55, 8.507059e+37 }
 0x2e7   : > { %v4346_v49 = vpack.c.bf16 %v2814_v20, %v2799_v36 }
 0x2e9   : > { %v4473_v53 = vpop.eup %4472  ;;  %4347 = vst [vmem:[%s5120_s20] sm:$0xff] %v4346_v49  }
 0x2ea   : > { %v4475_v50 = vpop.eup %4474  ;;  %v2785_v39 = vadd.f32 1.0, %v4473_v53 }
 0x2eb   : > { %v2817_v19 = vmul.f32 %v4475_v50, %v2784_v58  ;;  %vm2822_vm8 = vweird.f32 %v4475_v50 }
 0x2ec   : > { %4476 = vrcp.f32 %v2785_v39  ;;  %v2842_v33 = vand.u32 2147483648, %v2785_v39  ;;  %v2840_v38 = vand.u32 2147483647, %v2785_v39  ;;  %vm2823_vm11 = vmor %vm2821_vm9, %vm2822_vm8  ;;  %vm2836_vm12 = vweird.f32 %v2785_v39 }
 0x2ed   : > { %v2818_v22 = vsub.f32 1.0, %v2817_v19 }
 0x2ee   : > { %v2843_v46 = vor.u32 1.1754944e-38, %v2842_v33  ;;  %vm2841_vm15 = vcmp.eq.f32.partialorder %v2840_v38, 8.507059e+37 }
 0x2ef   : > { %v2819_v17 = vmul.f32 %v4475_v50, %v2818_v22 }
 0x2f1   : > { %v2820_v24 = vadd.f32 %v4475_v50, %v2819_v17 }
 0x2f2   : > { %v4477_v28 = vpop.eup %4476 }
 0x2f3   : > { %v2832_v27 = vmul.f32 %v4477_v28, %v2785_v39  ;;  %vm2837_vm10 = vweird.f32 %v4477_v28  ;;  %v2824_v8 = vsel %vm2823_vm11, %v4475_v50, %v2820_v24 }
 0x2f4   : > { %vm2838_vm13 = vmor %vm2836_vm12, %vm2837_vm10  ;;  %v2829_v44 = vsel %vm2826_vm14, %v2828_v56, %v2824_v8 }
 0x2f5   : > { %v2833_v51 = vsub.f32 1.0, %v2832_v27 }
 0x2f7   : > { %v2834_v21 = vmul.f32 %v4477_v28, %v2833_v51 }
 0x2f9   : > { %v2835_v45 = vadd.f32 %v4477_v28, %v2834_v21 }
 0x2fb   : > { %v2839_v10 = vsel %vm2838_vm13, %v4477_v28, %v2835_v45 }
 0x2fc   : > { %v2844_v15 = vsel %vm2841_vm15, %v2843_v46, %v2839_v10 }
 0x2fd   : > { %v4351_v48 = vpack.c.bf16 %v2844_v15, %v2829_v44 }
 0x2ff   : > { %4353 = vst [vmem:[%s5120_s20 + $0x8] sm:$0xff] %v4351_v48  }
 0x300 PF: > { %s5152_s22 = smov %s4800_s24  ;;  %p19_p4 = scmp.ge.s32.totalorder %s4791_s21, 4  }
 0x301   : > { %s5153_s24 = smov %s4662_s25  ;;  %s5154_s25 = smov %s4666_s26 }
 0x302   : > { %s5155_s26 = smov %s5152_s22  ;;  %s5156_s27 = smov %s4791_s21 }
 0x303   :  { %21 = sbr.rel (!%p19_p4) target bundleno = 5 (0x5), region = 104 }
 0x308   :  { %2876 = vsyncpa [#allocation3], 1 }
 0x309   :  { %2878 = vsyncpa [#allocation3 + $0x1], 1 }
 0x30a   :  { %2879 = vsyncpa [#allocation5], 1 }
 0x30b   :  { %2880 = vsyncpa [#allocation8], 1 }

</bundles_post_ra>
